<compile_context>
chip_gen: v7x
topology: tpu7x:2x2x1
jax: 0.10.0
libtpu: 0.0.40
codegen_flags: <defaults>
</compile_context>

<pallas_src>
import math

import jax
import jax.numpy as jnp
import numpy as np
from jax.experimental import pallas as pl
from jax.experimental.pallas import tpu as pltpu

# ----------------------------- configuration --------------------------------
B = 2             # batch
N = 64            # input points
F_IN = 13         # feature channels of `points`
NPOINT = 16       # sampled centres (npoint)
NSAMPLE = 16      # neighbours per centre (nsample)
RADIUS = 0.45
USE_XYZ = True
C_IN = F_IN + 3   # channels after xyz concat = 16
MLP = (64, 128)   # shared-MLP widths; MLP[-1] = output channels
BN_EPS = 1e-5

TOK = NPOINT * NSAMPLE      # 256 tokens per batch element
TOK_TOTAL = B * TOK         # 512: batch folded into the matmul M dimension
TBL = B * N                 # 128 rows in the flattened per-point feature table


# ------------------------------- Pallas kernel -------------------------------
def sa_kernel(tok_idx_ref,   # (TOK_TOTAL, 1) int32   flat neighbour index (b*N + idx)
              ctr_idx_ref,   # (TOK_TOTAL, 1) int32   flat centre index    (b*N + fps_idx)
              tbl_full_ref,  # (TBL, C_IN)   f32      [xyz | features] per point
              tbl_xyz_ref,   # (TBL, C_IN)   f32      [xyz | 0]        per point
              w1_ref, t1_ref,  # (C_IN, MLP0) bf16, (1, MLP0) f32  (BN folded)
              w2_ref, t2_ref,  # (MLP0, MLP1) bf16, (1, MLP1) f32  (BN folded)
              o_ref):          # (B, NPOINT, MLP1) f32
    # ---- in-kernel gather + centre subtraction via one-hot MXU matmuls ----
    # grouped = table[idx] ; grouped_xyz -= centre_xyz  (features untouched)
    col = jax.lax.broadcasted_iota(jnp.int32, (TOK_TOTAL, TBL), 1)
    onehot_tok = (col == tok_idx_ref[...]).astype(jnp.float32)   # (512, 128)
    onehot_ctr = (col == ctr_idx_ref[...]).astype(jnp.float32)   # (512, 128)
    x = (jnp.dot(onehot_tok, tbl_full_ref[...], preferred_element_type=jnp.float32)
         - jnp.dot(onehot_ctr, tbl_xyz_ref[...], preferred_element_type=jnp.float32))
    # x: (512, C_IN) f32, exact (one-hot gather / subtract in f32)

    # ---- shared MLP: Conv2d(k=1) + folded BN + ReLU, bf16 MXU / f32 acc ----
    h = jnp.dot(x.astype(jnp.bfloat16), w1_ref[...],
                preferred_element_type=jnp.float32) + t1_ref[...]
    h = jnp.maximum(h, 0.0)
    h = jnp.dot(h.astype(jnp.bfloat16), w2_ref[...],
                preferred_element_type=jnp.float32) + t2_ref[...]
    h = jnp.maximum(h, 0.0)                                       # (512, MLP1)

    # ---- torch.max(new_points, 3)[0]: max over the nsample axis ----
    h = h.reshape(B, NPOINT, NSAMPLE, MLP[-1])
    o_ref[...] = jnp.max(h, axis=2).astype(o_ref.dtype)           # (B, NPOINT, 128)


def _sa_mlp_pallas(tok_idx, ctr_idx, tbl_full, tbl_xyz, params):
    """Single-program Pallas call: all operands fully resident in VMEM (<1 MiB)."""
    (w1, t1), (w2, t2) = params
    return pl.pallas_call(
        sa_kernel,
        out_shape=jax.ShapeDtypeStruct((B, NPOINT, MLP[-1]), jnp.float32),
    )(tok_idx, ctr_idx, tbl_full, tbl_xyz, w1, t1, w2, t2)


# -------------------- sampling / ball query (plain JAX, wrapper) -------------
# TODO(synk): FPS and ball-query are data-dependent serial argmax + per-centre
#             sort (CUDA extensions in the original repo); they have no clean
#             rectangular-BlockSpec Pallas form at these sizes and dominate
#             end-to-end wall clock, so they stay in plain JAX here.
def _square_distance(a, b):
    # a: (B, S, 3), b: (B, N, 3) -> (B, S, N)
    return jnp.sum((a[:, :, None, :] - b[:, None, :, :]) ** 2, axis=-1)


def furthest_point_sample(xyz_t, npoint):
    # xyz_t: (B, N, 3) -> (B, npoint) int32 (starts from index 0, as in CUDA op)
    Bq, Nq, _ = xyz_t.shape

    def body(i, state):
        idx, dists, far = state
        idx = idx.at[:, i].set(far)
        centroid = jnp.take_along_axis(xyz_t, far[:, None, None], axis=1)  # (B,1,3)
        d = jnp.sum((xyz_t - centroid) ** 2, axis=-1)                      # (B,N)
        dists = jnp.minimum(dists, d)
        far = jnp.argmax(dists, axis=-1).astype(jnp.int32)
        return idx, dists, far

    init = (jnp.zeros((Bq, npoint), jnp.int32),
            jnp.full((Bq, Nq), 1e10, jnp.float32),
            jnp.zeros((Bq,), jnp.int32))
    idx, _, _ = jax.lax.fori_loop(0, npoint, body, init)
    return idx


def ball_query(radius, nsample, xyz_t, new_xyz_t):
    # xyz_t: (B, N, 3), new_xyz_t: (B, S, 3) -> (B, S, nsample) int32
    # First-nsample points (in index order) with d^2 < r^2, padded with the
    # first hit -- matches the CUDA ball_query (strict inequality).
    Bq, Nq, _ = xyz_t.shape
    S = new_xyz_t.shape[1]
    sqr = _square_distance(new_xyz_t, xyz_t)                               # (B,S,N)
    gidx = jnp.broadcast_to(jnp.arange(Nq, dtype=jnp.int32), (Bq, S, Nq))
    gidx = jnp.where(sqr >= radius * radius, Nq, gidx)
    gidx = jnp.sort(gidx, axis=-1)[:, :, :nsample]
    first = jnp.broadcast_to(gidx[:, :, :1], gidx.shape)
    return jnp.where(gidx == Nq, first, gidx)


def _gather_points(points, idx):
    # points: (B, C, N), idx: (B, ...) int -> (B, C, *idx.shape[1:])
    Bq, C, _ = points.shape
    flat = idx.reshape(Bq, -1)
    g = jnp.take_along_axis(points, flat[:, None, :], axis=2)             # (B,C,K)
    return g.reshape((Bq, C) + idx.shape[1:])


# ------------------------------- full forward --------------------------------
def pointnet_sa_forward(xyz, points, params):
    """xyz: (B,3,N), points: (B,F_IN,N)
       -> (new_xyz (B,3,npoint), new_points (B,MLP[-1],npoint))."""
    # data-dependent sampling: only indices + new_xyz are produced here
    xyz_t = jnp.transpose(xyz, (0, 2, 1))                                  # (B,N,3)
    fps_idx = furthest_point_sample(xyz_t, NPOINT)                         # (B,npoint)
    new_xyz = _gather_points(xyz, fps_idx)                                 # (B,3,npoint)
    idx = ball_query(RADIUS, NSAMPLE, xyz_t, jnp.transpose(new_xyz, (0, 2, 1)))

    # flattened per-point feature tables + flat token/centre indices for kernel
    points_t = jnp.transpose(points, (0, 2, 1))                            # (B,N,13)
    tbl_full = jnp.concatenate([xyz_t, points_t], axis=-1).reshape(TBL, C_IN)
    tbl_xyz = jnp.concatenate([xyz_t, jnp.zeros_like(points_t)],
                              axis=-1).reshape(TBL, C_IN)
    offs = (jnp.arange(B, dtype=jnp.int32) * N)[:, None, None]             # (B,1,1)
    tok_idx = (idx.astype(jnp.int32) + offs).reshape(TOK_TOTAL, 1)
    ctr_idx = (jnp.broadcast_to(fps_idx[:, :, None].astype(jnp.int32),
                                (B, NPOINT, NSAMPLE)) + offs).reshape(TOK_TOTAL, 1)

    pooled = _sa_mlp_pallas(tok_idx, ctr_idx, tbl_full, tbl_xyz, params)   # (B,npoint,128)
    # module contract returns channel-first (B, MLP[-1], npoint); the kernel
    # itself writes lane-dense channel-last -- drop this transpose if the
    # consumer can take channel-last.
    return new_xyz, jnp.transpose(pooled, (0, 2, 1))


# --------------------------- reference (plain JAX) ----------------------------
def ref_forward(xyz, points, params):
    xyz_t = jnp.transpose(xyz, (0, 2, 1))
    fps_idx = furthest_point_sample(xyz_t, NPOINT)
    new_xyz = _gather_points(xyz, fps_idx)
    idx = ball_query(RADIUS, NSAMPLE, xyz_t, jnp.transpose(new_xyz, (0, 2, 1)))
    grouped_xyz = _gather_points(xyz, idx) - new_xyz[:, :, :, None]        # (B,3,np,ns)
    grouped_pts = _gather_points(points, idx)                              # (B,13,np,ns)
    new_points = jnp.concatenate([grouped_xyz, grouped_pts], axis=1)       # (B,C_IN,np,ns)
    h = jnp.transpose(new_points, (0, 2, 3, 1)).reshape(B, TOK, C_IN)
    for w, t in params:
        h = jnp.dot(h.astype(jnp.bfloat16), w, preferred_element_type=jnp.float32) + t
        h = jnp.maximum(h, 0.0)
    pooled = jnp.max(h.reshape(B, NPOINT, NSAMPLE, MLP[-1]), axis=2)
    return new_xyz, jnp.transpose(pooled, (0, 2, 1))


# ------------------------------- param init -----------------------------------
# TODO(synk): BatchNorm2d is applied in inference (running-stats) form and
#             folded into the conv weights; training-mode batch statistics are
#             not computed in-kernel.
def init_params(key):
    params = []
    last = C_IN
    for out_c in MLP:
        key, kw, kb, kg, kbe, km, kv = jax.random.split(key, 7)
        bound = 1.0 / math.sqrt(last)
        w = jax.random.uniform(kw, (out_c, last), jnp.float32, -bound, bound)  # Conv2d (out,in,1,1)
        b = jax.random.uniform(kb, (out_c,), jnp.float32, -bound, bound)
        gamma = jax.random.uniform(kg, (out_c,), jnp.float32, 0.5, 1.5)
        beta = jax.random.uniform(kbe, (out_c,), jnp.float32, -0.5, 0.5)
        running_mean = 0.1 * jax.random.normal(km, (out_c,), jnp.float32)
        running_var = jax.random.uniform(kv, (out_c,), jnp.float32, 0.5, 1.5)
        s = gamma / jnp.sqrt(running_var + BN_EPS)
        w_fold = (w * s[:, None]).T.astype(jnp.bfloat16)                    # (in,out), BN scale folded
        t_fold = (s * (b - running_mean) + beta)[None, :].astype(jnp.float32)
        params.append((w_fold, t_fold))
        last = out_c
    return tuple(params)


# ---------------------------------- main ---------------------------------------
if __name__ == "__main__":
    key = jax.random.PRNGKey(0)
    kxyz, kpts, kpar = jax.random.split(key, 3)
    xyz = jax.random.uniform(kxyz, (B, 3, N), jnp.float32)
    points = 0.5 * jax.random.normal(kpts, (B, F_IN, N), jnp.float32)
    params = init_params(kpar)

    fwd = jax.jit(pointnet_sa_forward)
    new_xyz, new_points = jax.block_until_ready(fwd(xyz, points, params))

    ref_xyz, ref_points = ref_forward(xyz, points, params)
    np.testing.assert_allclose(np.asarray(new_xyz), np.asarray(ref_xyz),
                               rtol=1e-5, atol=1e-5)
    np.testing.assert_allclose(np.asarray(new_points), np.asarray(ref_points),
                               rtol=2e-3, atol=2e-3)
    assert new_xyz.shape == (B, 3, NPOINT)
    assert new_points.shape == (B, MLP[-1], NPOINT)

    print("KERNEL_OK")
</pallas_src>

<mosaic_0001>
module attributes {stable_mosaic.version = 11 : i64} {
  func.func @sa_kernel(%arg0: memref<512x1xi32, #tpu.memory_space<vmem>>, %arg1: memref<512x1xi32, #tpu.memory_space<vmem>>, %arg2: memref<128x16xf32, #tpu.memory_space<vmem>>, %arg3: memref<128x16xf32, #tpu.memory_space<vmem>>, %arg4: memref<16x64xbf16, #tpu.memory_space<vmem>>, %arg5: memref<1x64xf32, #tpu.memory_space<vmem>>, %arg6: memref<64x128xbf16, #tpu.memory_space<vmem>>, %arg7: memref<1x128xf32, #tpu.memory_space<vmem>>, %arg8: memref<2x16x128xf32, #tpu.memory_space<vmem>>) attributes {dimension_semantics = [], scalar_prefetch = 0 : i64, scratch_operands = 0 : i64, tpu.core_type = #tpu.core_type<tc>} {
    %0 = tpu.iota {dimensions = array<i32: 1>} : vector<512x128xi32>
    %c0 = arith.constant 0 : index
    %c0_0 = arith.constant 0 : index
    %1 = vector.load %arg0[%c0, %c0_0] : memref<512x1xi32, #tpu.memory_space<vmem>>, vector<512x1xi32>
    %2 = vector.broadcast %1 : vector<512x1xi32> to vector<512x128xi32>
    %3 = arith.cmpi eq, %0, %2 : vector<512x128xi32>
    %4 = arith.extui %3 : vector<512x128xi1> to vector<512x128xi32>
    %5 = arith.sitofp %4 : vector<512x128xi32> to vector<512x128xf32>
    %c0_1 = arith.constant 0 : index
    %c0_2 = arith.constant 0 : index
    %6 = vector.load %arg1[%c0_1, %c0_2] : memref<512x1xi32, #tpu.memory_space<vmem>>, vector<512x1xi32>
    %7 = vector.broadcast %6 : vector<512x1xi32> to vector<512x128xi32>
    %8 = arith.cmpi eq, %0, %7 : vector<512x128xi32>
    %9 = arith.extui %8 : vector<512x128xi1> to vector<512x128xi32>
    %10 = arith.sitofp %9 : vector<512x128xi32> to vector<512x128xf32>
    %c0_3 = arith.constant 0 : index
    %c0_4 = arith.constant 0 : index
    %11 = vector.load %arg2[%c0_3, %c0_4] : memref<128x16xf32, #tpu.memory_space<vmem>>, vector<128x16xf32>
    %cst = arith.constant dense<0.000000e+00> : vector<512x16xf32>
    %12 = tpu.matmul %5, %11, %cst {dimension_numbers = #tpu.dot_dimension_numbers<[1], [0], [0], [1], [0, 0, 1, 1], [], []>} : vector<512x128xf32>, vector<128x16xf32>, vector<512x16xf32> -> vector<512x16xf32>
    %c0_5 = arith.constant 0 : index
    %c0_6 = arith.constant 0 : index
    %13 = vector.load %arg3[%c0_5, %c0_6] : memref<128x16xf32, #tpu.memory_space<vmem>>, vector<128x16xf32>
    %cst_7 = arith.constant dense<0.000000e+00> : vector<512x16xf32>
    %14 = tpu.matmul %10, %13, %cst_7 {dimension_numbers = #tpu.dot_dimension_numbers<[1], [0], [0], [1], [0, 0, 1, 1], [], []>} : vector<512x128xf32>, vector<128x16xf32>, vector<512x16xf32> -> vector<512x16xf32>
    %15 = arith.subf %12, %14 : vector<512x16xf32>
    %16 = arith.truncf %15 : vector<512x16xf32> to vector<512x16xbf16>
    %c0_8 = arith.constant 0 : index
    %c0_9 = arith.constant 0 : index
    %17 = vector.load %arg4[%c0_8, %c0_9] : memref<16x64xbf16, #tpu.memory_space<vmem>>, vector<16x64xbf16>
    %cst_10 = arith.constant dense<0.000000e+00> : vector<512x64xf32>
    %18 = tpu.matmul %16, %17, %cst_10 {dimension_numbers = #tpu.dot_dimension_numbers<[1], [0], [0], [1], [0, 0, 1, 1], [], []>} : vector<512x16xbf16>, vector<16x64xbf16>, vector<512x64xf32> -> vector<512x64xf32>
    %c0_11 = arith.constant 0 : index
    %c0_12 = arith.constant 0 : index
    %19 = vector.load %arg5[%c0_11, %c0_12] : memref<1x64xf32, #tpu.memory_space<vmem>>, vector<1x64xf32>
    %20 = vector.broadcast %19 : vector<1x64xf32> to vector<512x64xf32>
    %21 = arith.addf %18, %20 : vector<512x64xf32>
    %cst_13 = arith.constant 0.000000e+00 : f32
    %22 = vector.broadcast %cst_13 : f32 to vector<512x64xf32>
    %23 = arith.maximumf %21, %22 : vector<512x64xf32>
    %24 = arith.truncf %23 : vector<512x64xf32> to vector<512x64xbf16>
    %c0_14 = arith.constant 0 : index
    %c0_15 = arith.constant 0 : index
    %25 = vector.load %arg6[%c0_14, %c0_15] : memref<64x128xbf16, #tpu.memory_space<vmem>>, vector<64x128xbf16>
    %cst_16 = arith.constant dense<0.000000e+00> : vector<512x128xf32>
    %26 = tpu.matmul %24, %25, %cst_16 {dimension_numbers = #tpu.dot_dimension_numbers<[1], [0], [0], [1], [0, 0, 1, 1], [], []>} : vector<512x64xbf16>, vector<64x128xbf16>, vector<512x128xf32> -> vector<512x128xf32>
    %c0_17 = arith.constant 0 : index
    %c0_18 = arith.constant 0 : index
    %27 = vector.load %arg7[%c0_17, %c0_18] : memref<1x128xf32, #tpu.memory_space<vmem>>, vector<1x128xf32>
    %28 = vector.broadcast %27 : vector<1x128xf32> to vector<512x128xf32>
    %29 = arith.addf %26, %28 : vector<512x128xf32>
    %cst_19 = arith.constant 0.000000e+00 : f32
    %30 = vector.broadcast %cst_19 : f32 to vector<512x128xf32>
    %31 = arith.maximumf %29, %30 : vector<512x128xf32>
    %32 = vector.shape_cast %31 : vector<512x128xf32> to vector<2x16x16x128xf32>
    %cst_20 = arith.constant dense<0xFF800000> : vector<2x16x128xf32>
    %33 = vector.multi_reduction <maximumf>, %32, %cst_20 [2] : vector<2x16x16x128xf32> to vector<2x16x128xf32>
    %c0_21 = arith.constant 0 : index
    %c0_22 = arith.constant 0 : index
    %c0_23 = arith.constant 0 : index
    %34 = vector.load %arg8[%c0_21, %c0_22, %c0_23] : memref<2x16x128xf32, #tpu.memory_space<vmem>>, vector<2x16x128xf32>
    tpu.vector_store %arg8[%c0_21, %c0_22, %c0_23], %33 {strides = array<i32>} : memref<2x16x128xf32, #tpu.memory_space<vmem>>, vector<2x16x128xf32>,
    return
  }
}

</mosaic_0001>

<bundles_post_ra>
// kernel: custom-call.4
= control target key start
LH: loop header
LB: loop body
LE: loop exit
PB: predicated region body
PF: predicated region fallthrough
CT: control target
= control target key end

     0   :  { %s6_s0 = inlined_call_operand.vmem [shape: f32[2,64], index: 0, kind: output, shape index: {}]  }

// kernel: pointnet_sa_forward.1
= control target key start
LH: loop header
LB: loop body
LE: loop exit
PB: predicated region body
PF: predicated region fallthrough
CT: control target
= control target key end

     0   :  { %v4178_v2 = vmov 0   ;;  %s5229_s0 = inlined_call_operand.vmem [shape: s32[512,1], index: 0, kind: input, shape index: {}]   ;;  %s5230_s1 = inlined_call_operand.vmem [shape: s32[512,1], index: 1, kind: input, shape index: {}]   ;;  %s5231_s2 = inlined_call_operand.vmem [shape: f32[128,16], index: 2, kind: input, shape index: {}]   ;;  %s5232_s3 = inlined_call_operand.vmem [shape: f32[128,16], index: 3, kind: input, shape index: {}]   ;;  %s5233_s4 = inlined_call_operand.vmem [shape: bf16[16,64], index: 4, kind: input, shape index: {}]   ;;  %s5234_s5 = inlined_call_operand.vmem [shape: f32[1,64], index: 5, kind: input, shape index: {}]   ;;  %s5235_s6 = inlined_call_operand.vmem [shape: bf16[64,128], index: 6, kind: input, shape index: {}]   ;;  %s5236_s7 = inlined_call_operand.vmem [shape: f32[1,128], index: 7, kind: input, shape index: {}]   ;;  %s5237_s8 = inlined_call_operand.hbm [shape: f32[2,16,128], index: 8, kind: output, shape index: {}]  }
   0x1   :  { %v34_v0 = vld [vmem:[%s5229_s0 + $0x8] sm:$0xff]  ;;  %v33_v1 = vld [vmem:[%s5229_s0] sm:$0xff]  ;;  %4148 = vset.pattern.permute.xlu1 %v4178_v2  ;;  %4147 = vset.pattern.permute.xlu0 %v4178_v2  ;;  %v483_v5 = vld [vmem:[%s5230_s1 + $0x10] sm:$0xff] }
   0x2   :  { %101 = vperm.xlu1 %4148, %v34_v0   ;;  %98 = vperm.xlu0 %4147, %v33_v1   ;;  %v482_v3 = vld [vmem:[%s5230_s1 + $0x8] sm:$0xff]  ;;  %v481_v4 = vld [vmem:[%s5230_s1] sm:$0xff]  ;;  %v35_v6 = vld [vmem:[%s5229_s0 + $0x10] sm:$0xff] }
   0x3   :  { %v484_v7 = vld [vmem:[%s5230_s1 + $0x18] sm:$0xff]  ;;  %v485_v9 = vld [vmem:[%s5230_s1 + $0x20] sm:$0xff]  ;;  %v930_v12 = vld [vmem:[%s5231_s2 + $0x8] sm:$0xff] }
   0x4   :  { %v36_v8 = vld [vmem:[%s5229_s0 + $0x18] sm:$0xff]  ;;  %v37_v10 = vld [vmem:[%s5229_s0 + $0x20] sm:$0xff]  ;;  %v931_v14 = vld [vmem:[%s5231_s2 + $0x10] sm:$0xff] }
   0x5   :  { %v929_v11 = vld [vmem:[%s5231_s2] sm:$0xff]  ;;  %v932_v15 = vld [vmem:[%s5231_s2 + $0x18] sm:$0xff]  ;;  %v486_v17 = vld [vmem:[%s5230_s1 + $0x28] sm:$0xff] }
   0x6   :  { %549 = vperm.xlu1 %4148, %v482_v3   ;;  %546 = vperm.xlu0 %4147, %v481_v4   ;;  %v4078_v13 = vpack.c.bf16 %v930_v12, %v929_v11  ;;  %v1330_v16 = vld [vmem:[%s5232_s3] sm:$0xff]  ;;  %v38_v18 = vld [vmem:[%s5229_s0 + $0x28] sm:$0xff]  ;;  %v4082_v19 = vpack.c.bf16 %v932_v15, %v931_v14  ;;  %v1332_v24 = vld [vmem:[%s5232_s3 + $0x10] sm:$0xff] }
   0x7   :  { %v1331_v20 = vld [vmem:[%s5232_s3 + $0x8] sm:$0xff]  ;;  %v933_v22 = vld [vmem:[%s5231_s2 + $0x20] sm:$0xff]  ;;  %v1333_v25 = vld [vmem:[%s5232_s3 + $0x18] sm:$0xff] }
   0x8   :  { %4079 = vmatprep.subr.bf16.mxu0 %v4078_v13  ;;  %v4110_v21 = vpack.c.bf16 %v1331_v20, %v1330_v16  ;;  %v934_v23 = vld [vmem:[%s5231_s2 + $0x28] sm:$0xff]  ;;  %v4114_v26 = vpack.c.bf16 %v1333_v25, %v1332_v24  ;;  %v1334_v27 = vld [vmem:[%s5232_s3 + $0x20] sm:$0xff]  ;;  %v487_v28 = vld [vmem:[%s5230_s1 + $0x30] sm:$0xff] }
   0x9   :  { %4081 = vmatpush3.bf16.msra.mxu0 %v4078_v13  ;;  %v39_v29 = vld [vmem:[%s5229_s0 + $0x30] sm:$0xff]  ;;  %v4086_v30 = vpack.c.bf16 %v934_v23, %v933_v22  ;;  %v1335_v31 = vld [vmem:[%s5232_s3 + $0x28] sm:$0xff]  ;;  %v936_v33 = vld [vmem:[%s5231_s2 + $0x38] sm:$0xff] }
   0xa   :  { %552 = vperm.xlu1 %4148, %v483_v5   ;;  %104 = vperm.xlu0 %4147, %v35_v6   ;;  %v935_v32 = vld [vmem:[%s5231_s2 + $0x30] sm:$0xff]  ;;  %v4118_v34 = vpack.c.bf16 %v1335_v31, %v1334_v27  ;;  %v1337_v36 = vld [vmem:[%s5232_s3 + $0x38] sm:$0xff]  ;;  %v937_v40 = vld [vmem:[%s5231_s2 + $0x40] sm:$0xff] }
   0xb   :  { %4083 = vmatprep.subr.bf16.mxu0 %v4082_v19  ;;  %4111 = vmatprep.subr.bf16.mxu1 %v4110_v21  ;;  %v1336_v35 = vld [vmem:[%s5232_s3 + $0x30] sm:$0xff]  ;;  %v488_v37 = vld [vmem:[%s5230_s1 + $0x38] sm:$0xff]  ;;  %v4090_v39 = vpack.c.bf16 %v936_v33, %v935_v32  ;;  %v938_v41 = vld [vmem:[%s5231_s2 + $0x48] sm:$0xff] }
   0xc   :  { %4113 = vmatpush3.bf16.msra.mxu1 %v4110_v21  ;;  %v40_v38 = vld [vmem:[%s5229_s0 + $0x38] sm:$0xff]  ;;  %v4122_v42 = vpack.c.bf16 %v1337_v36, %v1336_v35  ;;  %v1338_v43 = vld [vmem:[%s5232_s3 + $0x40] sm:$0xff]  ;;  %v1339_v44 = vld [vmem:[%s5232_s3 + $0x48] sm:$0xff]  ;;  %v4094_v47 = vpack.c.bf16 %v938_v41, %v937_v40 }
   0xd   :  { %4085 = vmatpush3.bf16.msra.mxu0 %v4082_v19  ;;  %4115 = vmatprep.subr.bf16.mxu1 %v4114_v26  ;;  %v489_v45 = vld [vmem:[%s5230_s1 + $0x40] sm:$0xff]  ;;  %v939_v48 = vld [vmem:[%s5231_s2 + $0x50] sm:$0xff]  ;;  %v940_v49 = vld [vmem:[%s5231_s2 + $0x58] sm:$0xff]  ;;  %v4126_v50 = vpack.c.bf16 %v1339_v44, %v1338_v43 }
   0xe   :  { %555 = vperm.xlu1 %4148, %v484_v7   ;;  %107 = vperm.xlu0 %4147, %v36_v8   ;;  %v41_v46 = vld [vmem:[%s5229_s0 + $0x40] sm:$0xff]  ;;  %v1340_v51 = vld [vmem:[%s5232_s3 + $0x50] sm:$0xff]  ;;  %v1341_v52 = vld [vmem:[%s5232_s3 + $0x58] sm:$0xff]  ;;  %v4098_v55 = vpack.c.bf16 %v940_v49, %v939_v48 }
   0xf   :  { %4087 = vmatprep.subr.bf16.mxu0 %v4086_v30  ;;  %v490_v53 = vld [vmem:[%s5230_s1 + $0x48] sm:$0xff]  ;;  %v941_v56 = vld [vmem:[%s5231_s2 + $0x60] sm:$0xff]  ;;  %v491_v58 = vld [vmem:[%s5230_s1 + $0x50] sm:$0xff]  ;;  %v4130_v60 = vpack.c.bf16 %v1341_v52, %v1340_v51 }
  0x10   :  { %4117 = vmatpush3.bf16.msra.mxu1 %v4114_v26  ;;  %v42_v54 = vld [vmem:[%s5229_s0 + $0x48] sm:$0xff]  ;;  %v43_v59 = vld [vmem:[%s5229_s0 + $0x50] sm:$0xff]  ;;  %v944_v62 = vld [vmem:[%s5231_s2 + $0x78] sm:$0xff] }
  0x11   :  { %4089 = vmatpush3.bf16.msra.mxu0 %v4086_v30  ;;  %4119 = vmatprep.subr.bf16.mxu1 %v4118_v34  ;;  %v942_v57 = vld [vmem:[%s5231_s2 + $0x68] sm:$0xff]  ;;  %v943_v61 = vld [vmem:[%s5231_s2 + $0x70] sm:$0xff]  ;;  %v1342_v63 = vld [vmem:[%s5232_s3 + $0x60] sm:$0xff] }
  0x12   :  { %558 = vperm.xlu1 %4148, %v485_v9   ;;  %110 = vperm.xlu0 %4147, %v37_v10   ;;  %v1343_v0 = vld [vmem:[%s5232_s3 + $0x68] sm:$0xff]  ;;  %v4102_v1 = vpack.c.bf16 %v942_v57, %v941_v56  ;;  %v1344_v3 = vld [vmem:[%s5232_s3 + $0x70] sm:$0xff]  ;;  %v1345_v4 = vld [vmem:[%s5232_s3 + $0x78] sm:$0xff] }
  0x13   :  { %4091 = vmatprep.subr.bf16.mxu0 %v4090_v39  ;;  %v4134_v2 = vpack.c.bf16 %v1343_v0, %v1342_v63 }
  0x14   :  { %4121 = vmatpush3.bf16.msra.mxu1 %v4118_v34 }
  0x15   :  { %4093 = vmatpush3.bf16.msra.mxu0 %v4090_v39  ;;  %4123 = vmatprep.subr.bf16.mxu1 %v4122_v42 }
  0x16   :  { %561 = vperm.xlu1 %4148, %v486_v17   ;;  %113 = vperm.xlu0 %4147, %v38_v18  }
  0x17   :  { %4095 = vmatprep.subr.bf16.mxu0 %v4094_v47 }
  0x18   :  { %4125 = vmatpush3.bf16.msra.mxu1 %v4122_v42 }
  0x19   :  { %4097 = vmatpush3.bf16.msra.mxu0 %v4094_v47  ;;  %4127 = vmatprep.subr.bf16.mxu1 %v4126_v50 }
  0x1a   :  { %564 = vperm.xlu1 %4148, %v487_v28   ;;  %116 = vperm.xlu0 %4147, %v39_v29  }
  0x1b   :  { %4099 = vmatprep.subr.bf16.mxu0 %v4098_v55 }
  0x1c   :  { %4129 = vmatpush3.bf16.msra.mxu1 %v4126_v50 }
  0x1d   :  { %4101 = vmatpush3.bf16.msra.mxu0 %v4098_v55  ;;  %4131 = vmatprep.subr.bf16.mxu1 %v4130_v60 }
  0x1e   :  { %567 = vperm.xlu1 %4148, %v488_v37   ;;  %119 = vperm.xlu0 %4147, %v40_v38  }
  0x22   :  { %570 = vperm.xlu1 %4148, %v489_v45   ;;  %122 = vperm.xlu0 %4147, %v41_v46  }
  0x26   :  { %573 = vperm.xlu1 %4148, %v490_v53   ;;  %125 = vperm.xlu0 %4147, %v42_v54  }
  0x2a   :  { %576 = vperm.xlu1 %4148, %v491_v58   ;;  %128 = vperm.xlu0 %4147, %v43_v59  }
  0x2b   :  { %13 = vsyncpa [#allocation3], 0  ;;  %v492_v5 = vld [vmem:[%s5230_s1 + $0x58] sm:$0xff]  ;;  %4103 = vmatprep.subr.bf16.mxu0 %v4102_v1  ;;  %v4106_v7 = vpack.c.bf16 %v944_v62, %v943_v61  ;;  %4133 = vmatpush3.bf16.msra.mxu1 %v4130_v60  ;;  %v4138_v8 = vpack.c.bf16 %v1345_v4, %v1344_v3  ;;  %v493_v9 = vld [vmem:[%s5230_s1 + $0x60] sm:$0xff]  ;;  %v31_v47 = vlaneseq  ;;  %v4179_v55 = vmov 1.0  }
  0x2c   :  { %v44_v6 = vld [vmem:[%s5229_s0 + $0x58] sm:$0xff]  ;;  %4105 = vmatpush3.bf16.msra.mxu0 %v4102_v1  ;;  %4135 = vmatprep.subr.bf16.mxu1 %v4134_v2  ;;  %v45_v10 = vld [vmem:[%s5229_s0 + $0x60] sm:$0xff]  ;;  %v494_v11 = vld [vmem:[%s5230_s1 + $0x68] sm:$0xff] }
  0x2d   :  { %4107 = vmatprep.subr.bf16.mxu0 %v4106_v7  ;;  %v46_v12 = vld [vmem:[%s5229_s0 + $0x68] sm:$0xff]  ;;  %v495_v13 = vld [vmem:[%s5230_s1 + $0x70] sm:$0xff]  ;;  %v496_v15 = vld [vmem:[%s5230_s1 + $0x78] sm:$0xff]  ;;  %v4516_v50 = vand.u32 127, %v31_v47 }
  0x2e   :  { %579 = vperm.xlu1 %4148, %v492_v5   ;;  %131 = vperm.xlu0 %4147, %v44_v6   ;;  %v47_v14 = vld [vmem:[%s5229_s0 + $0x70] sm:$0xff]  ;;  %v48_v16 = vld [vmem:[%s5229_s0 + $0x78] sm:$0xff]  ;;  %v497_v17 = vld [vmem:[%s5230_s1 + $0x80] sm:$0xff] }
  0x2f   :  { %4137 = vmatpush3.bf16.msra.mxu1 %v4134_v2  ;;  %v49_v18 = vld [vmem:[%s5229_s0 + $0x80] sm:$0xff]  ;;  %v498_v19 = vld [vmem:[%s5230_s1 + $0x88] sm:$0xff]  ;;  %v499_v21 = vld [vmem:[%s5230_s1 + $0x90] sm:$0xff] }
  0x30   :  { %4109 = vmatpush3.bf16.msra.mxu0 %v4106_v7  ;;  %4139 = vmatprep.subr.bf16.mxu1 %v4138_v8  ;;  %v50_v20 = vld [vmem:[%s5229_s0 + $0x88] sm:$0xff]  ;;  %v51_v22 = vld [vmem:[%s5229_s0 + $0x90] sm:$0xff]  ;;  %v500_v23 = vld [vmem:[%s5230_s1 + $0x98] sm:$0xff] }
  0x31   :  { %v52_v24 = vld [vmem:[%s5229_s0 + $0x98] sm:$0xff]  ;;  %v501_v25 = vld [vmem:[%s5230_s1 + $0xa0] sm:$0xff]  ;;  %v502_v27 = vld [vmem:[%s5230_s1 + $0xa8] sm:$0xff] }
  0x32   :  { %582 = vperm.xlu1 %4148, %v493_v9   ;;  %134 = vperm.xlu0 %4147, %v45_v10   ;;  %v53_v26 = vld [vmem:[%s5229_s0 + $0xa0] sm:$0xff]  ;;  %v54_v28 = vld [vmem:[%s5229_s0 + $0xa8] sm:$0xff]  ;;  %v503_v29 = vld [vmem:[%s5230_s1 + $0xb0] sm:$0xff] }
  0x33   :  { %4141 = vmatpush3.bf16.msra.mxu1 %v4138_v8  ;;  %v55_v30 = vld [vmem:[%s5229_s0 + $0xb0] sm:$0xff]  ;;  %v504_v31 = vld [vmem:[%s5230_s1 + $0xb8] sm:$0xff]  ;;  %v505_v33 = vld [vmem:[%s5230_s1 + $0xc0] sm:$0xff] }
  0x34   :  { %v56_v32 = vld [vmem:[%s5229_s0 + $0xb8] sm:$0xff]  ;;  %v57_v34 = vld [vmem:[%s5229_s0 + $0xc0] sm:$0xff]  ;;  %v506_v35 = vld [vmem:[%s5230_s1 + $0xc8] sm:$0xff] }
  0x35   :  { %v58_v36 = vld [vmem:[%s5229_s0 + $0xc8] sm:$0xff]  ;;  %v507_v37 = vld [vmem:[%s5230_s1 + $0xd0] sm:$0xff]  ;;  %v508_v39 = vld [vmem:[%s5230_s1 + $0xd8] sm:$0xff] }
  0x36   :  { %585 = vperm.xlu1 %4148, %v494_v11   ;;  %137 = vperm.xlu0 %4147, %v46_v12   ;;  %v59_v38 = vld [vmem:[%s5229_s0 + $0xd0] sm:$0xff]  ;;  %v60_v40 = vld [vmem:[%s5229_s0 + $0xd8] sm:$0xff]  ;;  %v509_v41 = vld [vmem:[%s5230_s1 + $0xe0] sm:$0xff] }
  0x37   :  { %v61_v42 = vld [vmem:[%s5229_s0 + $0xe0] sm:$0xff]  ;;  %v510_v43 = vld [vmem:[%s5230_s1 + $0xe8] sm:$0xff]  ;;  %v511_v45 = vld [vmem:[%s5230_s1 + $0xf0] sm:$0xff] }
  0x38   :  { %v62_v44 = vld [vmem:[%s5229_s0 + $0xe8] sm:$0xff]  ;;  %v63_v46 = vld [vmem:[%s5229_s0 + $0xf0] sm:$0xff]  ;;  %v512_v48 = vld [vmem:[%s5230_s1 + $0xf8] sm:$0xff] }
  0x39   :  { %v64_v49 = vld [vmem:[%s5229_s0 + $0xf8] sm:$0xff]  ;;  %v513_v51 = vld [vmem:[%s5230_s1 + $0x100] sm:$0xff]  ;;  %v514_v56 = vld [vmem:[%s5230_s1 + $0x108] sm:$0xff] }
  0x3a   :  { %588 = vperm.xlu1 %4148, %v495_v13   ;;  %140 = vperm.xlu0 %4147, %v47_v14   ;;  %v65_v52 = vld [vmem:[%s5229_s0 + $0x100] sm:$0xff]  ;;  %v66_v57 = vld [vmem:[%s5229_s0 + $0x108] sm:$0xff]  ;;  %v515_v60 = vld [vmem:[%s5230_s1 + $0x110] sm:$0xff] }
  0x3b   :  { %v67_v61 = vld [vmem:[%s5229_s0 + $0x110] sm:$0xff]  ;;  %v516_v0 = vld [vmem:[%s5230_s1 + $0x118] sm:$0xff]  ;;  %v517_v4 = vld [vmem:[%s5230_s1 + $0x120] sm:$0xff] }
  0x3c   :  { %v68_v1 = vld [vmem:[%s5229_s0 + $0x118] sm:$0xff]  ;;  %v69_v5 = vld [vmem:[%s5229_s0 + $0x120] sm:$0xff]  ;;  %v518_v8 = vld [vmem:[%s5230_s1 + $0x128] sm:$0xff] }
  0x3d   :  { %v70_v9 = vld [vmem:[%s5229_s0 + $0x128] sm:$0xff]  ;;  %v519_v12 = vld [vmem:[%s5230_s1 + $0x130] sm:$0xff] }
  0x3e   :  { %591 = vperm.xlu1 %4148, %v496_v15   ;;  %143 = vperm.xlu0 %4147, %v48_v16   ;;  %v71_v13 = vld [vmem:[%s5229_s0 + $0x130] sm:$0xff]  ;;  %v520_v16 = vld [vmem:[%s5230_s1 + $0x138] sm:$0xff] }
  0x42   :  { %594 = vperm.xlu1 %4148, %v497_v17   ;;  %146 = vperm.xlu0 %4147, %v49_v18   ;;  %v72_v17 = vld [vmem:[%s5229_s0 + $0x138] sm:$0xff] }
  0x46   :  { %597 = vperm.xlu1 %4148, %v498_v19   ;;  %149 = vperm.xlu0 %4147, %v50_v20   ;;  %v521_v20 = vld [vmem:[%s5230_s1 + $0x140] sm:$0xff] }
  0x4a   :  { %600 = vperm.xlu1 %4148, %v499_v21   ;;  %152 = vperm.xlu0 %4147, %v51_v22   ;;  %v73_v21 = vld [vmem:[%s5229_s0 + $0x140] sm:$0xff] }
  0x4e   :  { %603 = vperm.xlu1 %4148, %v500_v23   ;;  %155 = vperm.xlu0 %4147, %v52_v24   ;;  %v522_v24 = vld [vmem:[%s5230_s1 + $0x148] sm:$0xff] }
  0x52   :  { %606 = vperm.xlu1 %4148, %v501_v25   ;;  %158 = vperm.xlu0 %4147, %v53_v26   ;;  %v74_v25 = vld [vmem:[%s5229_s0 + $0x148] sm:$0xff] }
  0x56   :  { %609 = vperm.xlu1 %4148, %v502_v27   ;;  %161 = vperm.xlu0 %4147, %v54_v28   ;;  %v523_v28 = vld [vmem:[%s5230_s1 + $0x150] sm:$0xff] }
  0x5a   :  { %612 = vperm.xlu1 %4148, %v503_v29   ;;  %164 = vperm.xlu0 %4147, %v55_v30   ;;  %v75_v29 = vld [vmem:[%s5229_s0 + $0x150] sm:$0xff] }
  0x5e   :  { %615 = vperm.xlu1 %4148, %v504_v31   ;;  %167 = vperm.xlu0 %4147, %v56_v32   ;;  %v524_v32 = vld [vmem:[%s5230_s1 + $0x158] sm:$0xff] }
  0x62   :  { %618 = vperm.xlu1 %4148, %v505_v33   ;;  %170 = vperm.xlu0 %4147, %v57_v34   ;;  %v76_v33 = vld [vmem:[%s5229_s0 + $0x158] sm:$0xff] }
  0x66   :  { %621 = vperm.xlu1 %4148, %v506_v35   ;;  %173 = vperm.xlu0 %4147, %v58_v36   ;;  %v525_v36 = vld [vmem:[%s5230_s1 + $0x160] sm:$0xff] }
  0x6a   :  { %624 = vperm.xlu1 %4148, %v507_v37   ;;  %176 = vperm.xlu0 %4147, %v59_v38   ;;  %v77_v37 = vld [vmem:[%s5229_s0 + $0x160] sm:$0xff] }
  0x6e   :  { %627 = vperm.xlu1 %4148, %v508_v39   ;;  %179 = vperm.xlu0 %4147, %v60_v40   ;;  %v526_v40 = vld [vmem:[%s5230_s1 + $0x168] sm:$0xff] }
  0x72   :  { %630 = vperm.xlu1 %4148, %v509_v41   ;;  %182 = vperm.xlu0 %4147, %v61_v42   ;;  %v78_v41 = vld [vmem:[%s5229_s0 + $0x168] sm:$0xff] }
  0x76   :  { %633 = vperm.xlu1 %4148, %v510_v43   ;;  %185 = vperm.xlu0 %4147, %v62_v44   ;;  %v527_v44 = vld [vmem:[%s5230_s1 + $0x170] sm:$0xff] }
  0x7a   :  { %636 = vperm.xlu1 %4148, %v511_v45   ;;  %188 = vperm.xlu0 %4147, %v63_v46   ;;  %v79_v45 = vld [vmem:[%s5229_s0 + $0x170] sm:$0xff] }
  0x7e   :  { %639 = vperm.xlu1 %4148, %v512_v48   ;;  %191 = vperm.xlu0 %4147, %v64_v49   ;;  %v528_v48 = vld [vmem:[%s5230_s1 + $0x178] sm:$0xff] }
  0x7f   :  { %v80_v49 = vld [vmem:[%s5229_s0 + $0x178] sm:$0xff] }
  0x81   :  { %v102_v53 = vpop.permute.xlu1 %101  ;;  %v99_v54 = vpop.permute.xlu0 %98 }
  0x82   :  { %vm290_vm0 = vcmp.eq.s32.totalorder %v4516_v50, %v102_v53  ;;  %642 = vperm.xlu1 %4148, %v513_v51   ;;  %194 = vperm.xlu0 %4147, %v65_v52   ;;  %vm289_vm1 = vcmp.eq.s32.totalorder %v4516_v50, %v99_v54  ;;  %v529_v53 = vld [vmem:[%s5230_s1 + $0x180] sm:$0xff] }
  0x83   :  { %3716 = vmatprep.mubr.msk.f32.mxu0 %vm289_vm1, %v4179_v55  ;;  %v81_v54 = vld [vmem:[%s5229_s0 + $0x180] sm:$0xff] }
  0x84   :  { %3717 = vmatmul.mubr.msk.f32.vlgmr.msra.gmra.mrb[0].mxu0 %vm290_vm0, %v4179_v55 }
  0x85   :  { %v550_v58 = vpop.permute.xlu1 %549  ;;  %v547_v59 = vpop.permute.xlu0 %546 }
  0x86   :  { %vm738_vm2 = vcmp.eq.s32.totalorder %v4516_v50, %v550_v58  ;;  %645 = vperm.xlu1 %4148, %v514_v56   ;;  %197 = vperm.xlu0 %4147, %v66_v57   ;;  %vm737_vm3 = vcmp.eq.s32.totalorder %v4516_v50, %v547_v59  ;;  %v530_v58 = vld [vmem:[%s5230_s1 + $0x188] sm:$0xff] }
  0x87   :  { %3844 = vmatprep.mubr.msk.f32.mxu1 %vm737_vm3, %v4179_v55  ;;  %v82_v59 = vld [vmem:[%s5229_s0 + $0x188] sm:$0xff] }
  0x88   :  { %3845 = vmatmul.mubr.msk.f32.vlgmr.msra.gmra.mrb[0].mxu1 %vm738_vm2, %v4179_v55 }
  0x89   :  { %v553_v62 = vpop.permute.xlu1 %552  ;;  %v105_v63 = vpop.permute.xlu0 %104 }
  0x8a   :  { %vm739_vm4 = vcmp.eq.s32.totalorder %v4516_v50, %v553_v62  ;;  %vm291_vm5 = vcmp.eq.s32.totalorder %v4516_v50, %v105_v63  ;;  %648 = vperm.xlu1 %4148, %v515_v60   ;;  %200 = vperm.xlu0 %4147, %v67_v61   ;;  %v531_v62 = vld [vmem:[%s5230_s1 + $0x190] sm:$0xff] }
  0x8b   :  { %3719 = vmatprep.mubr.msk.f32.mxu0 %vm291_vm5, %v4179_v55  ;;  %3847 = vmatprep.mubr.msk.f32.mxu1 %vm739_vm4, %v4179_v55  ;;  %v83_v63 = vld [vmem:[%s5229_s0 + $0x190] sm:$0xff] }
  0x8d   :  { %v556_v2 = vpop.permute.xlu1 %555  ;;  %v108_v3 = vpop.permute.xlu0 %107 }
  0x8e   :  { %vm740_vm6 = vcmp.eq.s32.totalorder %v4516_v50, %v556_v2  ;;  %vm292_vm7 = vcmp.eq.s32.totalorder %v4516_v50, %v108_v3  ;;  %651 = vperm.xlu1 %4148, %v516_v0   ;;  %203 = vperm.xlu0 %4147, %v68_v1   ;;  %v532_v2 = vld [vmem:[%s5230_s1 + $0x198] sm:$0xff] }
  0x8f   :  { %3720 = vmatmul.mubr.msk.f32.gmra.mrb[2].mxu0 %vm292_vm7, %v4179_v55  ;;  %3848 = vmatmul.mubr.msk.f32.gmra.mrb[2].mxu1 %vm740_vm6, %v4179_v55  ;;  %v84_v3 = vld [vmem:[%s5229_s0 + $0x198] sm:$0xff] }
  0x91   :  { %v559_v6 = vpop.permute.xlu1 %558  ;;  %v111_v7 = vpop.permute.xlu0 %110 }
  0x92   :  { %vm741_vm8 = vcmp.eq.s32.totalorder %v4516_v50, %v559_v6  ;;  %vm293_vm9 = vcmp.eq.s32.totalorder %v4516_v50, %v111_v7  ;;  %654 = vperm.xlu1 %4148, %v517_v4   ;;  %206 = vperm.xlu0 %4147, %v69_v5   ;;  %v533_v6 = vld [vmem:[%s5230_s1 + $0x1a0] sm:$0xff] }
  0x93   :  { %3722 = vmatprep.mubr.msk.f32.mxu0 %vm293_vm9, %v4179_v55  ;;  %3850 = vmatprep.mubr.msk.f32.mxu1 %vm741_vm8, %v4179_v55  ;;  %v85_v7 = vld [vmem:[%s5229_s0 + $0x1a0] sm:$0xff] }
  0x95   :  { %v562_v10 = vpop.permute.xlu1 %561  ;;  %v114_v11 = vpop.permute.xlu0 %113 }
  0x96   :  { %vm742_vm10 = vcmp.eq.s32.totalorder %v4516_v50, %v562_v10  ;;  %vm294_vm11 = vcmp.eq.s32.totalorder %v4516_v50, %v114_v11  ;;  %657 = vperm.xlu1 %4148, %v518_v8   ;;  %209 = vperm.xlu0 %4147, %v70_v9   ;;  %v534_v10 = vld [vmem:[%s5230_s1 + $0x1a8] sm:$0xff] }
  0x97   :  { %3723 = vmatmul.mubr.msk.f32.gmra.mrb[4].mxu0 %vm294_vm11, %v4179_v55  ;;  %3851 = vmatmul.mubr.msk.f32.gmra.mrb[4].mxu1 %vm742_vm10, %v4179_v55  ;;  %v86_v11 = vld [vmem:[%s5229_s0 + $0x1a8] sm:$0xff] }
  0x99   :  { %v565_v14 = vpop.permute.xlu1 %564  ;;  %v117_v15 = vpop.permute.xlu0 %116 }
  0x9a   :  { %vm743_vm12 = vcmp.eq.s32.totalorder %v4516_v50, %v565_v14  ;;  %vm295_vm13 = vcmp.eq.s32.totalorder %v4516_v50, %v117_v15  ;;  %660 = vperm.xlu1 %4148, %v519_v12   ;;  %212 = vperm.xlu0 %4147, %v71_v13   ;;  %v535_v14 = vld [vmem:[%s5230_s1 + $0x1b0] sm:$0xff] }
  0x9b   :  { %3725 = vmatprep.mubr.msk.f32.mxu0 %vm295_vm13, %v4179_v55  ;;  %3853 = vmatprep.mubr.msk.f32.mxu1 %vm743_vm12, %v4179_v55  ;;  %v87_v15 = vld [vmem:[%s5229_s0 + $0x1b0] sm:$0xff] }
  0x9d   :  { %v568_v18 = vpop.permute.xlu1 %567  ;;  %v120_v19 = vpop.permute.xlu0 %119 }
  0x9e   :  { %vm744_vm14 = vcmp.eq.s32.totalorder %v4516_v50, %v568_v18  ;;  %vm296_vm15 = vcmp.eq.s32.totalorder %v4516_v50, %v120_v19  ;;  %663 = vperm.xlu1 %4148, %v520_v16   ;;  %215 = vperm.xlu0 %4147, %v72_v17   ;;  %v536_v18 = vld [vmem:[%s5230_s1 + $0x1b8] sm:$0xff] }
  0x9f   :  { %3726 = vmatmul.mubr.msk.f32.gmra.mrb[6].mxu0 %vm296_vm15, %v4179_v55  ;;  %3854 = vmatmul.mubr.msk.f32.gmra.mrb[6].mxu1 %vm744_vm14, %v4179_v55  ;;  %v88_v19 = vld [vmem:[%s5229_s0 + $0x1b8] sm:$0xff] }
  0xa1   :  { %v571_v22 = vpop.permute.xlu1 %570  ;;  %v123_v23 = vpop.permute.xlu0 %122 }
  0xa2   :  { %vm745_vm0 = vcmp.eq.s32.totalorder %v4516_v50, %v571_v22  ;;  %vm297_vm1 = vcmp.eq.s32.totalorder %v4516_v50, %v123_v23  ;;  %666 = vperm.xlu1 %4148, %v521_v20   ;;  %218 = vperm.xlu0 %4147, %v73_v21   ;;  %v537_v22 = vld [vmem:[%s5230_s1 + $0x1c0] sm:$0xff] }
  0xa3   :  { %3728 = vmatprep.mubr.msk.f32.mxu0 %vm297_vm1, %v4179_v55  ;;  %3856 = vmatprep.mubr.msk.f32.mxu1 %vm745_vm0, %v4179_v55  ;;  %v89_v23 = vld [vmem:[%s5229_s0 + $0x1c0] sm:$0xff] }
  0xa5   :  { %v574_v26 = vpop.permute.xlu1 %573  ;;  %v126_v27 = vpop.permute.xlu0 %125 }
  0xa6   :  { %vm746_vm2 = vcmp.eq.s32.totalorder %v4516_v50, %v574_v26  ;;  %vm298_vm3 = vcmp.eq.s32.totalorder %v4516_v50, %v126_v27  ;;  %669 = vperm.xlu1 %4148, %v522_v24   ;;  %221 = vperm.xlu0 %4147, %v74_v25   ;;  %v4149_v24 = vld [vmem:[%s5233_s4] sm:$0xff]   ;;  %v538_v27 = vld [vmem:[%s5230_s1 + $0x1c8] sm:$0xff] }
  0xa7   :  { %3729 = vmatmul.mubr.msk.f32.gmra.mrb[8].mxu0 %vm298_vm3, %v4179_v55  ;;  %3857 = vmatmul.mubr.msk.f32.gmra.mrb[8].mxu1 %vm746_vm2, %v4179_v55 }
  0xa8   :  { %3940 = vmatprep.subr.bf16.mxu0 %v4149_v24 }
  0xa9   :  { %v577_v30 = vpop.permute.xlu1 %576  ;;  %v129_v31 = vpop.permute.xlu0 %128  ;;  %3941 = vmatpush3.bf16.msra.mxu0 %v4149_v24 }
  0xaa   :  { %vm747_vm4 = vcmp.eq.s32.totalorder %v4516_v50, %v577_v30  ;;  %vm299_vm5 = vcmp.eq.s32.totalorder %v4516_v50, %v129_v31  ;;  %672 = vperm.xlu1 %4148, %v523_v28   ;;  %224 = vperm.xlu0 %4147, %v75_v29   ;;  %v90_v28 = vld [vmem:[%s5229_s0 + $0x1c8] sm:$0xff]  ;;  %v539_v31 = vld [vmem:[%s5230_s1 + $0x1d0] sm:$0xff] }
  0xab   :  { %3731 = vmatprep.mubr.msk.f32.mxu0 %vm299_vm5, %v4179_v55  ;;  %3859 = vmatprep.mubr.msk.f32.mxu1 %vm747_vm4, %v4179_v55 }
  0xad   :  { %v580_v34 = vpop.permute.xlu1 %579  ;;  %v132_v35 = vpop.permute.xlu0 %131 }
  0xae   :  { %vm748_vm6 = vcmp.eq.s32.totalorder %v4516_v50, %v580_v34  ;;  %vm300_vm7 = vcmp.eq.s32.totalorder %v4516_v50, %v132_v35  ;;  %675 = vperm.xlu1 %4148, %v524_v32   ;;  %227 = vperm.xlu0 %4147, %v76_v33   ;;  %v91_v32 = vld [vmem:[%s5229_s0 + $0x1d0] sm:$0xff]  ;;  %v540_v35 = vld [vmem:[%s5230_s1 + $0x1d8] sm:$0xff] }
  0xaf   :  { %3732 = vmatmul.mubr.msk.f32.gmra.mrb[10].mxu0 %vm300_vm7, %v4179_v55  ;;  %3860 = vmatmul.mubr.msk.f32.gmra.mrb[10].mxu1 %vm748_vm6, %v4179_v55 }
  0xb1   :  { %v583_v38 = vpop.permute.xlu1 %582  ;;  %v135_v39 = vpop.permute.xlu0 %134 }
  0xb2   :  { %vm749_vm8 = vcmp.eq.s32.totalorder %v4516_v50, %v583_v38  ;;  %vm301_vm9 = vcmp.eq.s32.totalorder %v4516_v50, %v135_v39  ;;  %678 = vperm.xlu1 %4148, %v525_v36   ;;  %230 = vperm.xlu0 %4147, %v77_v37   ;;  %v92_v36 = vld [vmem:[%s5229_s0 + $0x1d8] sm:$0xff]  ;;  %v541_v39 = vld [vmem:[%s5230_s1 + $0x1e0] sm:$0xff] }
  0xb3   :  { %3734 = vmatprep.mubr.msk.f32.mxu0 %vm301_vm9, %v4179_v55  ;;  %3862 = vmatprep.mubr.msk.f32.mxu1 %vm749_vm8, %v4179_v55 }
  0xb5   :  { %v586_v42 = vpop.permute.xlu1 %585  ;;  %v138_v43 = vpop.permute.xlu0 %137 }
  0xb6   :  { %vm750_vm10 = vcmp.eq.s32.totalorder %v4516_v50, %v586_v42  ;;  %vm302_vm11 = vcmp.eq.s32.totalorder %v4516_v50, %v138_v43  ;;  %681 = vperm.xlu1 %4148, %v526_v40   ;;  %233 = vperm.xlu0 %4147, %v78_v41   ;;  %v93_v40 = vld [vmem:[%s5229_s0 + $0x1e0] sm:$0xff]  ;;  %v542_v43 = vld [vmem:[%s5230_s1 + $0x1e8] sm:$0xff] }
  0xb7   :  { %3735 = vmatmul.mubr.msk.f32.gmra.mrb[12].mxu0 %vm302_vm11, %v4179_v55  ;;  %3863 = vmatmul.mubr.msk.f32.gmra.mrb[12].mxu1 %vm750_vm10, %v4179_v55 }
  0xb9   :  { %v589_v46 = vpop.permute.xlu1 %588  ;;  %v141_v47 = vpop.permute.xlu0 %140 }
  0xba   :  { %vm751_vm12 = vcmp.eq.s32.totalorder %v4516_v50, %v589_v46  ;;  %vm303_vm13 = vcmp.eq.s32.totalorder %v4516_v50, %v141_v47  ;;  %684 = vperm.xlu1 %4148, %v527_v44   ;;  %236 = vperm.xlu0 %4147, %v79_v45   ;;  %v94_v44 = vld [vmem:[%s5229_s0 + $0x1e8] sm:$0xff]  ;;  %v543_v47 = vld [vmem:[%s5230_s1 + $0x1f0] sm:$0xff] }
  0xbb   :  { %3737 = vmatprep.mubr.msk.f32.mxu0 %vm303_vm13, %v4179_v55  ;;  %3865 = vmatprep.mubr.msk.f32.mxu1 %vm751_vm12, %v4179_v55 }
  0xbd   :  { %v592_v51 = vpop.permute.xlu1 %591  ;;  %v144_v52 = vpop.permute.xlu0 %143 }
  0xbe   :  { %vm752_vm14 = vcmp.eq.s32.totalorder %v4516_v50, %v592_v51  ;;  %vm304_vm15 = vcmp.eq.s32.totalorder %v4516_v50, %v144_v52  ;;  %687 = vperm.xlu1 %4148, %v528_v48   ;;  %239 = vperm.xlu0 %4147, %v80_v49   ;;  %v95_v48 = vld [vmem:[%s5229_s0 + $0x1f0] sm:$0xff]  ;;  %v544_v52 = vld [vmem:[%s5230_s1 + $0x1f8] sm:$0xff] }
  0xbf   :  { %3738 = vmatmul.mubr.msk.f32.gmra.mrb[14].mxu0 %vm304_vm15, %v4179_v55  ;;  %3866 = vmatmul.mubr.msk.f32.gmra.mrb[14].mxu1 %vm752_vm14, %v4179_v55 }
  0xc1   :  { %v595_v56 = vpop.permute.xlu1 %594  ;;  %v147_v57 = vpop.permute.xlu0 %146 }
  0xc2   :  { %vm753_vm0 = vcmp.eq.s32.totalorder %v4516_v50, %v595_v56  ;;  %vm305_vm1 = vcmp.eq.s32.totalorder %v4516_v50, %v147_v57  ;;  %690 = vperm.xlu1 %4148, %v529_v53   ;;  %242 = vperm.xlu0 %4147, %v81_v54   ;;  %v96_v53 = vld [vmem:[%s5229_s0 + $0x1f8] sm:$0xff] }
  0xc3   :  { %3740 = vmatprep.mubr.msk.f32.mxu0 %vm305_vm1, %v4179_v55  ;;  %3868 = vmatprep.mubr.msk.f32.mxu1 %vm753_vm0, %v4179_v55 }
  0xc5   :  { %v598_v60 = vpop.permute.xlu1 %597  ;;  %v150_v61 = vpop.permute.xlu0 %149 }
  0xc6   :  { %vm754_vm2 = vcmp.eq.s32.totalorder %v4516_v50, %v598_v60  ;;  %vm306_vm3 = vcmp.eq.s32.totalorder %v4516_v50, %v150_v61  ;;  %693 = vperm.xlu1 %4148, %v530_v58   ;;  %245 = vperm.xlu0 %4147, %v82_v59  }
  0xc7   :  { %3741 = vmatmul.mubr.msk.f32.gmra.mrb[16].mxu0 %vm306_vm3, %v4179_v55  ;;  %3869 = vmatmul.mubr.msk.f32.gmra.mrb[16].mxu1 %vm754_vm2, %v4179_v55 }
  0xc9   :  { %v601_v0 = vpop.permute.xlu1 %600  ;;  %v153_v1 = vpop.permute.xlu0 %152 }
  0xca   :  { %vm755_vm4 = vcmp.eq.s32.totalorder %v4516_v50, %v601_v0  ;;  %vm307_vm5 = vcmp.eq.s32.totalorder %v4516_v50, %v153_v1  ;;  %696 = vperm.xlu1 %4148, %v531_v62   ;;  %248 = vperm.xlu0 %4147, %v83_v63  }
  0xcb   :  { %3743 = vmatprep.mubr.msk.f32.mxu0 %vm307_vm5, %v4179_v55  ;;  %3871 = vmatprep.mubr.msk.f32.mxu1 %vm755_vm4, %v4179_v55 }
  0xcd   :  { %v604_v4 = vpop.permute.xlu1 %603  ;;  %v156_v5 = vpop.permute.xlu0 %155 }
  0xce   :  { %vm756_vm6 = vcmp.eq.s32.totalorder %v4516_v50, %v604_v4  ;;  %vm308_vm7 = vcmp.eq.s32.totalorder %v4516_v50, %v156_v5  ;;  %699 = vperm.xlu1 %4148, %v532_v2   ;;  %251 = vperm.xlu0 %4147, %v84_v3  }
  0xcf   :  { %3744 = vmatmul.mubr.msk.f32.gmra.mrb[18].mxu0 %vm308_vm7, %v4179_v55  ;;  %3872 = vmatmul.mubr.msk.f32.gmra.mrb[18].mxu1 %vm756_vm6, %v4179_v55 }
  0xd1   :  { %v607_v8 = vpop.permute.xlu1 %606  ;;  %v159_v9 = vpop.permute.xlu0 %158 }
  0xd2   :  { %vm757_vm8 = vcmp.eq.s32.totalorder %v4516_v50, %v607_v8  ;;  %vm309_vm9 = vcmp.eq.s32.totalorder %v4516_v50, %v159_v9  ;;  %702 = vperm.xlu1 %4148, %v533_v6   ;;  %254 = vperm.xlu0 %4147, %v85_v7  }
  0xd3   :  { %3746 = vmatprep.mubr.msk.f32.mxu0 %vm309_vm9, %v4179_v55  ;;  %3874 = vmatprep.mubr.msk.f32.mxu1 %vm757_vm8, %v4179_v55 }
  0xd5   :  { %v610_v12 = vpop.permute.xlu1 %609  ;;  %v162_v13 = vpop.permute.xlu0 %161 }
  0xd6   :  { %vm758_vm10 = vcmp.eq.s32.totalorder %v4516_v50, %v610_v12  ;;  %vm310_vm11 = vcmp.eq.s32.totalorder %v4516_v50, %v162_v13  ;;  %705 = vperm.xlu1 %4148, %v534_v10   ;;  %257 = vperm.xlu0 %4147, %v86_v11  }
  0xd7   :  { %3747 = vmatmul.mubr.msk.f32.gmra.mrb[20].mxu0 %vm310_vm11, %v4179_v55  ;;  %3875 = vmatmul.mubr.msk.f32.gmra.mrb[20].mxu1 %vm758_vm10, %v4179_v55 }
  0xd9   :  { %v613_v16 = vpop.permute.xlu1 %612  ;;  %v165_v17 = vpop.permute.xlu0 %164 }
  0xda   :  { %vm759_vm12 = vcmp.eq.s32.totalorder %v4516_v50, %v613_v16  ;;  %vm311_vm13 = vcmp.eq.s32.totalorder %v4516_v50, %v165_v17  ;;  %708 = vperm.xlu1 %4148, %v535_v14   ;;  %260 = vperm.xlu0 %4147, %v87_v15  }
  0xdb   :  { %3749 = vmatprep.mubr.msk.f32.mxu0 %vm311_vm13, %v4179_v55  ;;  %3877 = vmatprep.mubr.msk.f32.mxu1 %vm759_vm12, %v4179_v55 }
  0xdd   :  { %v616_v20 = vpop.permute.xlu1 %615  ;;  %v168_v21 = vpop.permute.xlu0 %167 }
  0xde   :  { %vm760_vm14 = vcmp.eq.s32.totalorder %v4516_v50, %v616_v20  ;;  %vm312_vm15 = vcmp.eq.s32.totalorder %v4516_v50, %v168_v21  ;;  %711 = vperm.xlu1 %4148, %v536_v18   ;;  %263 = vperm.xlu0 %4147, %v88_v19  }
  0xdf   :  { %3750 = vmatmul.mubr.msk.f32.gmra.mrb[22].mxu0 %vm312_vm15, %v4179_v55  ;;  %3878 = vmatmul.mubr.msk.f32.gmra.mrb[22].mxu1 %vm760_vm14, %v4179_v55 }
  0xe1   :  { %v619_v25 = vpop.permute.xlu1 %618  ;;  %v171_v26 = vpop.permute.xlu0 %170 }
  0xe2   :  { %vm761_vm0 = vcmp.eq.s32.totalorder %v4516_v50, %v619_v25  ;;  %vm313_vm1 = vcmp.eq.s32.totalorder %v4516_v50, %v171_v26  ;;  %714 = vperm.xlu1 %4148, %v537_v22   ;;  %266 = vperm.xlu0 %4147, %v89_v23  }
  0xe3   :  { %3752 = vmatprep.mubr.msk.f32.mxu0 %vm313_vm1, %v4179_v55  ;;  %3880 = vmatprep.mubr.msk.f32.mxu1 %vm761_vm0, %v4179_v55 }
  0xe5   :  { %v622_v29 = vpop.permute.xlu1 %621  ;;  %v174_v30 = vpop.permute.xlu0 %173 }
  0xe6   :  { %vm762_vm2 = vcmp.eq.s32.totalorder %v4516_v50, %v622_v29  ;;  %vm314_vm3 = vcmp.eq.s32.totalorder %v4516_v50, %v174_v30  ;;  %717 = vperm.xlu1 %4148, %v538_v27   ;;  %269 = vperm.xlu0 %4147, %v90_v28  }
  0xe7   :  { %3753 = vmatmul.mubr.msk.f32.gmra.mrb[24].mxu0 %vm314_vm3, %v4179_v55  ;;  %3881 = vmatmul.mubr.msk.f32.gmra.mrb[24].mxu1 %vm762_vm2, %v4179_v55 }
  0xe9   :  { %v625_v33 = vpop.permute.xlu1 %624  ;;  %v177_v34 = vpop.permute.xlu0 %176 }
  0xea   :  { %vm763_vm4 = vcmp.eq.s32.totalorder %v4516_v50, %v625_v33  ;;  %vm315_vm5 = vcmp.eq.s32.totalorder %v4516_v50, %v177_v34  ;;  %720 = vperm.xlu1 %4148, %v539_v31   ;;  %272 = vperm.xlu0 %4147, %v91_v32  }
  0xeb   :  { %3755 = vmatprep.mubr.msk.f32.mxu0 %vm315_vm5, %v4179_v55  ;;  %3883 = vmatprep.mubr.msk.f32.mxu1 %vm763_vm4, %v4179_v55 }
  0xed   :  { %v628_v37 = vpop.permute.xlu1 %627  ;;  %v180_v38 = vpop.permute.xlu0 %179 }
  0xee   :  { %vm764_vm6 = vcmp.eq.s32.totalorder %v4516_v50, %v628_v37  ;;  %vm316_vm7 = vcmp.eq.s32.totalorder %v4516_v50, %v180_v38  ;;  %723 = vperm.xlu1 %4148, %v540_v35   ;;  %275 = vperm.xlu0 %4147, %v92_v36  }
  0xef   :  { %3756 = vmatmul.mubr.msk.f32.gmra.mrb[26].mxu0 %vm316_vm7, %v4179_v55  ;;  %3884 = vmatmul.mubr.msk.f32.gmra.mrb[26].mxu1 %vm764_vm6, %v4179_v55 }
  0xf1   :  { %v631_v41 = vpop.permute.xlu1 %630  ;;  %v183_v42 = vpop.permute.xlu0 %182 }
  0xf2   :  { %vm765_vm8 = vcmp.eq.s32.totalorder %v4516_v50, %v631_v41  ;;  %vm317_vm9 = vcmp.eq.s32.totalorder %v4516_v50, %v183_v42  ;;  %726 = vperm.xlu1 %4148, %v541_v39   ;;  %278 = vperm.xlu0 %4147, %v93_v40  }
  0xf3   :  { %3758 = vmatprep.mubr.msk.f32.mxu0 %vm317_vm9, %v4179_v55  ;;  %3886 = vmatprep.mubr.msk.f32.mxu1 %vm765_vm8, %v4179_v55 }
  0xf5   :  { %v634_v45 = vpop.permute.xlu1 %633  ;;  %v186_v46 = vpop.permute.xlu0 %185 }
  0xf6   :  { %vm766_vm10 = vcmp.eq.s32.totalorder %v4516_v50, %v634_v45  ;;  %vm318_vm11 = vcmp.eq.s32.totalorder %v4516_v50, %v186_v46  ;;  %729 = vperm.xlu1 %4148, %v542_v43   ;;  %281 = vperm.xlu0 %4147, %v94_v44  }
  0xf7   :  { %3759 = vmatmul.mubr.msk.f32.gmra.mrb[28].mxu0 %vm318_vm11, %v4179_v55  ;;  %3887 = vmatmul.mubr.msk.f32.gmra.mrb[28].mxu1 %vm766_vm10, %v4179_v55 }
  0xf9   :  { %v637_v49 = vpop.permute.xlu1 %636  ;;  %v189_v51 = vpop.permute.xlu0 %188 }
  0xfa   :  { %vm767_vm12 = vcmp.eq.s32.totalorder %v4516_v50, %v637_v49  ;;  %vm319_vm13 = vcmp.eq.s32.totalorder %v4516_v50, %v189_v51  ;;  %732 = vperm.xlu1 %4148, %v543_v47   ;;  %284 = vperm.xlu0 %4147, %v95_v48  }
  0xfb   :  { %3761 = vmatprep.mubr.msk.f32.mxu0 %vm319_vm13, %v4179_v55  ;;  %3889 = vmatprep.mubr.msk.f32.mxu1 %vm767_vm12, %v4179_v55 }
  0xfd   :  { %v640_v54 = vpop.permute.xlu1 %639  ;;  %v192_v56 = vpop.permute.xlu0 %191 }
  0xfe   :  { %vm768_vm14 = vcmp.eq.s32.totalorder %v4516_v50, %v640_v54  ;;  %vm320_vm15 = vcmp.eq.s32.totalorder %v4516_v50, %v192_v56  ;;  %735 = vperm.xlu1 %4148, %v544_v52   ;;  %287 = vperm.xlu0 %4147, %v96_v53  }
  0xff   :  { %3762 = vmatmul.mubr.msk.f32.gmra.mrb[30].mxu0 %vm320_vm15, %v4179_v55  ;;  %3890 = vmatmul.mubr.msk.f32.gmra.mrb[30].mxu1 %vm768_vm14, %v4179_v55 }
 0x101   :  { %v643_v57 = vpop.permute.xlu1 %642  ;;  %v195_v58 = vpop.permute.xlu0 %194 }
 0x102   :  { %vm769_vm0 = vcmp.eq.s32.totalorder %v4516_v50, %v643_v57  ;;  %vm321_vm1 = vcmp.eq.s32.totalorder %v4516_v50, %v195_v58 }
 0x103   :  { %3764 = vmatprep.mubr.msk.f32.mxu0 %vm321_vm1, %v4179_v55  ;;  %3892 = vmatprep.mubr.msk.f32.mxu1 %vm769_vm0, %v4179_v55 }
 0x105   :  { %v646_v59 = vpop.permute.xlu1 %645  ;;  %v198_v60 = vpop.permute.xlu0 %197 }
 0x106   :  { %vm770_vm2 = vcmp.eq.s32.totalorder %v4516_v50, %v646_v59  ;;  %vm322_vm3 = vcmp.eq.s32.totalorder %v4516_v50, %v198_v60 }
 0x107   :  { %3765 = vmatmul.mubr.msk.f32.gmra.mrb[32].mxu0 %vm322_vm3, %v4179_v55  ;;  %3893 = vmatmul.mubr.msk.f32.gmra.mrb[32].mxu1 %vm770_vm2, %v4179_v55 }
 0x109   :  { %v649_v61 = vpop.permute.xlu1 %648  ;;  %v201_v62 = vpop.permute.xlu0 %200 }
 0x10a   :  { %vm771_vm4 = vcmp.eq.s32.totalorder %v4516_v50, %v649_v61  ;;  %vm323_vm5 = vcmp.eq.s32.totalorder %v4516_v50, %v201_v62 }
 0x10b   :  { %3767 = vmatprep.mubr.msk.f32.mxu0 %vm323_vm5, %v4179_v55  ;;  %3895 = vmatprep.mubr.msk.f32.mxu1 %vm771_vm4, %v4179_v55 }
 0x10d   :  { %v652_v63 = vpop.permute.xlu1 %651  ;;  %v204_v0 = vpop.permute.xlu0 %203 }
 0x10e   :  { %vm772_vm6 = vcmp.eq.s32.totalorder %v4516_v50, %v652_v63  ;;  %vm324_vm7 = vcmp.eq.s32.totalorder %v4516_v50, %v204_v0 }
 0x10f   :  { %3768 = vmatmul.mubr.msk.f32.gmra.mrb[34].mxu0 %vm324_vm7, %v4179_v55  ;;  %3896 = vmatmul.mubr.msk.f32.gmra.mrb[34].mxu1 %vm772_vm6, %v4179_v55 }
 0x111   :  { %v655_v1 = vpop.permute.xlu1 %654  ;;  %v207_v2 = vpop.permute.xlu0 %206 }
 0x112   :  { %vm773_vm8 = vcmp.eq.s32.totalorder %v4516_v50, %v655_v1  ;;  %vm325_vm9 = vcmp.eq.s32.totalorder %v4516_v50, %v207_v2 }
 0x113   :  { %3770 = vmatprep.mubr.msk.f32.mxu0 %vm325_vm9, %v4179_v55  ;;  %3898 = vmatprep.mubr.msk.f32.mxu1 %vm773_vm8, %v4179_v55 }
 0x115   :  { %v658_v3 = vpop.permute.xlu1 %657  ;;  %v210_v4 = vpop.permute.xlu0 %209 }
 0x116   :  { %vm774_vm10 = vcmp.eq.s32.totalorder %v4516_v50, %v658_v3  ;;  %vm326_vm11 = vcmp.eq.s32.totalorder %v4516_v50, %v210_v4 }
 0x117   :  { %3771 = vmatmul.mubr.msk.f32.gmra.mrb[36].mxu0 %vm326_vm11, %v4179_v55  ;;  %3899 = vmatmul.mubr.msk.f32.gmra.mrb[36].mxu1 %vm774_vm10, %v4179_v55 }
 0x119   :  { %v661_v5 = vpop.permute.xlu1 %660  ;;  %v213_v6 = vpop.permute.xlu0 %212 }
 0x11a   :  { %vm775_vm12 = vcmp.eq.s32.totalorder %v4516_v50, %v661_v5  ;;  %vm327_vm13 = vcmp.eq.s32.totalorder %v4516_v50, %v213_v6 }
 0x11b   :  { %3773 = vmatprep.mubr.msk.f32.mxu0 %vm327_vm13, %v4179_v55  ;;  %3901 = vmatprep.mubr.msk.f32.mxu1 %vm775_vm12, %v4179_v55 }
 0x11d   :  { %v664_v7 = vpop.permute.xlu1 %663  ;;  %v216_v8 = vpop.permute.xlu0 %215 }
 0x11e   :  { %vm776_vm14 = vcmp.eq.s32.totalorder %v4516_v50, %v664_v7  ;;  %vm328_vm15 = vcmp.eq.s32.totalorder %v4516_v50, %v216_v8 }
 0x11f   :  { %3774 = vmatmul.mubr.msk.f32.gmra.mrb[38].mxu0 %vm328_vm15, %v4179_v55  ;;  %3902 = vmatmul.mubr.msk.f32.gmra.mrb[38].mxu1 %vm776_vm14, %v4179_v55 }
 0x121   :  { %v667_v9 = vpop.permute.xlu1 %666  ;;  %v219_v10 = vpop.permute.xlu0 %218 }
 0x122   :  { %vm777_vm0 = vcmp.eq.s32.totalorder %v4516_v50, %v667_v9  ;;  %vm329_vm1 = vcmp.eq.s32.totalorder %v4516_v50, %v219_v10 }
 0x123   :  { %3776 = vmatprep.mubr.msk.f32.mxu0 %vm329_vm1, %v4179_v55  ;;  %3904 = vmatprep.mubr.msk.f32.mxu1 %vm777_vm0, %v4179_v55 }
 0x125   :  { %v670_v11 = vpop.permute.xlu1 %669  ;;  %v222_v12 = vpop.permute.xlu0 %221 }
 0x126   :  { %vm778_vm2 = vcmp.eq.s32.totalorder %v4516_v50, %v670_v11  ;;  %vm330_vm3 = vcmp.eq.s32.totalorder %v4516_v50, %v222_v12 }
 0x127   :  { %3777 = vmatmul.mubr.msk.f32.gmra.mrb[40].mxu0 %vm330_vm3, %v4179_v55  ;;  %3905 = vmatmul.mubr.msk.f32.gmra.mrb[40].mxu1 %vm778_vm2, %v4179_v55 }
 0x129   :  { %v673_v13 = vpop.permute.xlu1 %672  ;;  %v225_v14 = vpop.permute.xlu0 %224 }
 0x12a   :  { %vm779_vm4 = vcmp.eq.s32.totalorder %v4516_v50, %v673_v13  ;;  %vm331_vm5 = vcmp.eq.s32.totalorder %v4516_v50, %v225_v14 }
 0x12b   :  { %3779 = vmatprep.mubr.msk.f32.mxu0 %vm331_vm5, %v4179_v55  ;;  %3907 = vmatprep.mubr.msk.f32.mxu1 %vm779_vm4, %v4179_v55 }
 0x12d   :  { %v676_v15 = vpop.permute.xlu1 %675  ;;  %v228_v16 = vpop.permute.xlu0 %227 }
 0x12e   :  { %vm780_vm6 = vcmp.eq.s32.totalorder %v4516_v50, %v676_v15  ;;  %vm332_vm7 = vcmp.eq.s32.totalorder %v4516_v50, %v228_v16 }
 0x12f   :  { %3780 = vmatmul.mubr.msk.f32.gmra.mrb[42].mxu0 %vm332_vm7, %v4179_v55  ;;  %3908 = vmatmul.mubr.msk.f32.gmra.mrb[42].mxu1 %vm780_vm6, %v4179_v55 }
 0x131   :  { %v679_v17 = vpop.permute.xlu1 %678  ;;  %v231_v18 = vpop.permute.xlu0 %230 }
 0x132   :  { %vm781_vm8 = vcmp.eq.s32.totalorder %v4516_v50, %v679_v17  ;;  %vm333_vm9 = vcmp.eq.s32.totalorder %v4516_v50, %v231_v18 }
 0x133   :  { %3782 = vmatprep.mubr.msk.f32.mxu0 %vm333_vm9, %v4179_v55  ;;  %3910 = vmatprep.mubr.msk.f32.mxu1 %vm781_vm8, %v4179_v55 }
 0x135   :  { %v682_v19 = vpop.permute.xlu1 %681  ;;  %v234_v20 = vpop.permute.xlu0 %233 }
 0x136   :  { %vm782_vm10 = vcmp.eq.s32.totalorder %v4516_v50, %v682_v19  ;;  %vm334_vm11 = vcmp.eq.s32.totalorder %v4516_v50, %v234_v20 }
 0x137   :  { %3783 = vmatmul.mubr.msk.f32.gmra.mrb[44].mxu0 %vm334_vm11, %v4179_v55  ;;  %3911 = vmatmul.mubr.msk.f32.gmra.mrb[44].mxu1 %vm782_vm10, %v4179_v55 }
 0x139   :  { %v685_v21 = vpop.permute.xlu1 %684  ;;  %v237_v22 = vpop.permute.xlu0 %236 }
 0x13a   :  { %vm783_vm12 = vcmp.eq.s32.totalorder %v4516_v50, %v685_v21  ;;  %vm335_vm13 = vcmp.eq.s32.totalorder %v4516_v50, %v237_v22 }
 0x13b   :  { %3785 = vmatprep.mubr.msk.f32.mxu0 %vm335_vm13, %v4179_v55  ;;  %3913 = vmatprep.mubr.msk.f32.mxu1 %vm783_vm12, %v4179_v55 }
 0x13d   :  { %v688_v23 = vpop.permute.xlu1 %687  ;;  %v240_v24 = vpop.permute.xlu0 %239 }
 0x13e   :  { %vm784_vm14 = vcmp.eq.s32.totalorder %v4516_v50, %v688_v23  ;;  %vm336_vm15 = vcmp.eq.s32.totalorder %v4516_v50, %v240_v24 }
 0x13f   :  { %3786 = vmatmul.mubr.msk.f32.gmra.mrb[46].mxu0 %vm336_vm15, %v4179_v55  ;;  %3914 = vmatmul.mubr.msk.f32.gmra.mrb[46].mxu1 %vm784_vm14, %v4179_v55 }
 0x141   :  { %v691_v25 = vpop.permute.xlu1 %690  ;;  %v243_v26 = vpop.permute.xlu0 %242 }
 0x142   :  { %vm785_vm0 = vcmp.eq.s32.totalorder %v4516_v50, %v691_v25  ;;  %vm337_vm1 = vcmp.eq.s32.totalorder %v4516_v50, %v243_v26 }
 0x143   :  { %3788 = vmatprep.mubr.msk.f32.mxu0 %vm337_vm1, %v4179_v55  ;;  %3916 = vmatprep.mubr.msk.f32.mxu1 %vm785_vm0, %v4179_v55 }
 0x145   :  { %v694_v27 = vpop.permute.xlu1 %693  ;;  %v246_v28 = vpop.permute.xlu0 %245 }
 0x146   :  { %vm786_vm2 = vcmp.eq.s32.totalorder %v4516_v50, %v694_v27  ;;  %vm338_vm3 = vcmp.eq.s32.totalorder %v4516_v50, %v246_v28 }
 0x147   :  { %3789 = vmatmul.mubr.msk.f32.gmra.mrb[48].mxu0 %vm338_vm3, %v4179_v55  ;;  %3917 = vmatmul.mubr.msk.f32.gmra.mrb[48].mxu1 %vm786_vm2, %v4179_v55 }
 0x149   :  { %v697_v29 = vpop.permute.xlu1 %696  ;;  %v249_v30 = vpop.permute.xlu0 %248 }
 0x14a   :  { %vm787_vm4 = vcmp.eq.s32.totalorder %v4516_v50, %v697_v29  ;;  %vm339_vm5 = vcmp.eq.s32.totalorder %v4516_v50, %v249_v30 }
 0x14b   :  { %3791 = vmatprep.mubr.msk.f32.mxu0 %vm339_vm5, %v4179_v55  ;;  %3919 = vmatprep.mubr.msk.f32.mxu1 %vm787_vm4, %v4179_v55 }
 0x14d   :  { %v700_v31 = vpop.permute.xlu1 %699  ;;  %v252_v32 = vpop.permute.xlu0 %251 }
 0x14e   :  { %vm788_vm6 = vcmp.eq.s32.totalorder %v4516_v50, %v700_v31  ;;  %vm340_vm7 = vcmp.eq.s32.totalorder %v4516_v50, %v252_v32 }
 0x14f   :  { %3792 = vmatmul.mubr.msk.f32.gmra.mrb[50].mxu0 %vm340_vm7, %v4179_v55  ;;  %3920 = vmatmul.mubr.msk.f32.gmra.mrb[50].mxu1 %vm788_vm6, %v4179_v55 }
 0x151   :  { %v703_v33 = vpop.permute.xlu1 %702  ;;  %v255_v34 = vpop.permute.xlu0 %254 }
 0x152   :  { %vm789_vm8 = vcmp.eq.s32.totalorder %v4516_v50, %v703_v33  ;;  %vm341_vm9 = vcmp.eq.s32.totalorder %v4516_v50, %v255_v34 }
 0x153   :  { %3794 = vmatprep.mubr.msk.f32.mxu0 %vm341_vm9, %v4179_v55  ;;  %3922 = vmatprep.mubr.msk.f32.mxu1 %vm789_vm8, %v4179_v55 }
 0x155   :  { %v706_v35 = vpop.permute.xlu1 %705  ;;  %v258_v36 = vpop.permute.xlu0 %257 }
 0x156   :  { %vm790_vm10 = vcmp.eq.s32.totalorder %v4516_v50, %v706_v35  ;;  %vm342_vm11 = vcmp.eq.s32.totalorder %v4516_v50, %v258_v36 }
 0x157   :  { %v3718_v37 = vpop.f32.mrb[0].mxu0  ;;  %3795 = vmatmul.mubr.msk.f32.gmra.mrb[52].mxu0 %vm342_vm11, %v4179_v55  ;;  %3923 = vmatmul.mubr.msk.f32.gmra.mrb[52].mxu1 %vm790_vm10, %v4179_v55 }
 0x158   :  { %v1011_v38 = vpop.f32.mrb[1].mxu0 }
 0x159   :  { %v709_v39 = vpop.permute.xlu1 %708  ;;  %v261_v40 = vpop.permute.xlu0 %260 }
 0x15a   :  { %vm791_vm12 = vcmp.eq.s32.totalorder %v4516_v50, %v709_v39  ;;  %vm343_vm13 = vcmp.eq.s32.totalorder %v4516_v50, %v261_v40 }
 0x15b   :  { %3797 = vmatprep.mubr.msk.f32.mxu0 %vm343_vm13, %v4179_v55  ;;  %v3846_v41 = vpop.f32.mrb[0].mxu1  ;;  %3925 = vmatprep.mubr.msk.f32.mxu1 %vm791_vm12, %v4179_v55 }
 0x15c   :  { %v1732_v42 = vsub.f32 %v3718_v37, %v3846_v41  ;;  %v1412_v43 = vpop.f32.mrb[1].mxu1 }
 0x15d   :  { %v1731_v44 = vsub.f32 %v1011_v38, %v1412_v43  ;;  %v712_v45 = vpop.permute.xlu1 %711  ;;  %v264_v46 = vpop.permute.xlu0 %263 }
 0x15e   :  { %vm792_vm14 = vcmp.eq.s32.totalorder %v4516_v50, %v712_v45  ;;  %vm344_vm15 = vcmp.eq.s32.totalorder %v4516_v50, %v264_v46 }
 0x15f   :  { %v4935_v47 = vpack.c.bf16 %v1732_v42, %v1731_v44  ;;  %3798 = vmatmul.mubr.msk.f32.gmra.mrb[54].mxu0 %vm344_vm15, %v4179_v55  ;;  %3926 = vmatmul.mubr.msk.f32.gmra.mrb[54].mxu1 %vm792_vm14, %v4179_v55  ;;  %vm1842_vm14 = vcmask 130048  }
 0x161   :  { %v715_v48 = vpop.permute.xlu1 %714  ;;  %v267_v49 = vpop.permute.xlu0 %266 }
 0x162   :  { %vm793_vm0 = vcmp.eq.s32.totalorder %v4516_v50, %v715_v48  ;;  %vm345_vm1 = vcmp.eq.s32.totalorder %v4516_v50, %v267_v49  ;;  %v3721_v51 = vpop.f32.mrb[2].mxu0  ;;  %v3849_v52 = vpop.f32.mrb[2].mxu1 }
 0x163   :  { %v1734_v53 = vsub.f32 %v3721_v51, %v3849_v52  ;;  %v1021_v54 = vpop.f32.mrb[3].mxu0  ;;  %3800 = vmatprep.mubr.msk.f32.mxu0 %vm345_vm1, %v4179_v55  ;;  %v1422_v56 = vpop.f32.mrb[3].mxu1  ;;  %3928 = vmatprep.mubr.msk.f32.mxu1 %vm793_vm0, %v4179_v55  ;;  %vm2363_vm1 = vcmask 523264  }
 0x164   :  { %v1733_v57 = vsub.f32 %v1021_v54, %v1422_v56 }
 0x165   :  { %v718_v58 = vpop.permute.xlu1 %717  ;;  %v270_v59 = vpop.permute.xlu0 %269 }
 0x166   :  { %v4943_v60 = vpack.c.bf16 %v1734_v53, %v1733_v57  ;;  %vm794_vm2 = vcmp.eq.s32.totalorder %v4516_v50, %v718_v58  ;;  %vm346_vm3 = vcmp.eq.s32.totalorder %v4516_v50, %v270_v59 }
 0x167   :  { %3801 = vmatmul.mubr.msk.f32.gmra.mrb[56].mxu0 %vm346_vm3, %v4179_v55  ;;  %3929 = vmatmul.mubr.msk.f32.gmra.mrb[56].mxu1 %vm794_vm2, %v4179_v55  ;;  %vm3069_vm2 = vcmask 1041409   ;;  %vm3071_vm3 = vcmask 1042434  }
 0x169   :  { %v721_v61 = vpop.permute.xlu1 %720  ;;  %v273_v62 = vpop.permute.xlu0 %272 }
 0x16a   :  { %vm795_vm4 = vcmp.eq.s32.totalorder %v4516_v50, %v721_v61  ;;  %vm347_vm5 = vcmp.eq.s32.totalorder %v4516_v50, %v273_v62  ;;  %v3724_v63 = vpop.f32.mrb[4].mxu0  ;;  %v3852_v0 = vpop.f32.mrb[4].mxu1 }
 0x16b   :  { %v1736_v1 = vsub.f32 %v3724_v63, %v3852_v0  ;;  %v1031_v2 = vpop.f32.mrb[5].mxu0  ;;  %3803 = vmatprep.mubr.msk.f32.mxu0 %vm347_vm5, %v4179_v55  ;;  %v1432_v3 = vpop.f32.mrb[5].mxu1  ;;  %3931 = vmatprep.mubr.msk.f32.mxu1 %vm795_vm4, %v4179_v55  ;;  %vm3073_vm4 = vcmask 1043459   ;;  %vm3075_vm5 = vcmask 1044484  }
 0x16c   :  { %v1735_v4 = vsub.f32 %v1031_v2, %v1432_v3 }
 0x16d   :  { %v724_v5 = vpop.permute.xlu1 %723  ;;  %v276_v6 = vpop.permute.xlu0 %275 }
 0x16e   :  { %v1797_v7 = vpack.c.bf16 %v1736_v1, %v1735_v4  ;;  %vm796_vm6 = vcmp.eq.s32.totalorder %v4516_v50, %v724_v5  ;;  %vm348_vm7 = vcmp.eq.s32.totalorder %v4516_v50, %v276_v6 }
 0x16f   :  { %3804 = vmatmul.mubr.msk.f32.gmra.mrb[58].mxu0 %vm348_vm7, %v4179_v55  ;;  %3932 = vmatmul.mubr.msk.f32.gmra.mrb[58].mxu1 %vm796_vm6, %v4179_v55  ;;  %vm3077_vm6 = vcmask 1045509   ;;  %vm3079_vm7 = vcmask 1046534  }
 0x171   :  { %v727_v8 = vpop.permute.xlu1 %726  ;;  %v279_v9 = vpop.permute.xlu0 %278 }
 0x172   :  { %vm797_vm8 = vcmp.eq.s32.totalorder %v4516_v50, %v727_v8  ;;  %vm349_vm9 = vcmp.eq.s32.totalorder %v4516_v50, %v279_v9  ;;  %v3727_v10 = vpop.f32.mrb[6].mxu0  ;;  %v3855_v11 = vpop.f32.mrb[6].mxu1 }
 0x173   :  { %v1738_v12 = vsub.f32 %v3727_v10, %v3855_v11  ;;  %v1041_v13 = vpop.f32.mrb[7].mxu0  ;;  %3806 = vmatprep.mubr.msk.f32.mxu0 %vm349_vm9, %v4179_v55  ;;  %v1442_v14 = vpop.f32.mrb[7].mxu1  ;;  %3934 = vmatprep.mubr.msk.f32.mxu1 %vm797_vm8, %v4179_v55  ;;  %vm3081_vm8 = vcmask 1047559  }
 0x174   :  { %v1737_v15 = vsub.f32 %v1041_v13, %v1442_v14 }
 0x175   :  { %v730_v16 = vpop.permute.xlu1 %729  ;;  %v282_v17 = vpop.permute.xlu0 %281 }
 0x176   :  { %v1798_v18 = vpack.c.bf16 %v1738_v12, %v1737_v15  ;;  %vm798_vm10 = vcmp.eq.s32.totalorder %v4516_v50, %v730_v16  ;;  %vm350_vm11 = vcmp.eq.s32.totalorder %v4516_v50, %v282_v17 }
 0x177   :  { %3807 = vmatmul.mubr.msk.f32.gmra.mrb[60].mxu0 %vm350_vm11, %v4179_v55  ;;  %3935 = vmatmul.mubr.msk.f32.gmra.mrb[60].mxu1 %vm798_vm10, %v4179_v55 }
 0x179   :  { %v733_v19 = vpop.permute.xlu1 %732  ;;  %v285_v20 = vpop.permute.xlu0 %284 }
 0x17a   :  { %vm799_vm12 = vcmp.eq.s32.totalorder %v4516_v50, %v733_v19  ;;  %vm351_vm13 = vcmp.eq.s32.totalorder %v4516_v50, %v285_v20  ;;  %v3730_v21 = vpop.f32.mrb[8].mxu0  ;;  %v3858_v22 = vpop.f32.mrb[8].mxu1 }
 0x17b   :  { %v1740_v23 = vsub.f32 %v3730_v21, %v3858_v22  ;;  %v1051_v24 = vpop.f32.mrb[9].mxu0  ;;  %3809 = vmatprep.mubr.msk.f32.mxu0 %vm351_vm13, %v4179_v55  ;;  %v1452_v25 = vpop.f32.mrb[9].mxu1  ;;  %3937 = vmatprep.mubr.msk.f32.mxu1 %vm799_vm12, %v4179_v55  ;;  %v4150_v22 = vld [vmem:[%s5235_s6] sm:$0xff]  }
 0x17c   :  { %v1739_v26 = vsub.f32 %v1051_v24, %v1452_v25  ;;  %4006 = vmatprep.subr.bf16.mxu1 %v4150_v22 }
 0x17d   :  { %v736_v27 = vpop.permute.xlu1 %735  ;;  %v288_v28 = vpop.permute.xlu0 %287  ;;  %4007 = vmatpush3.bf16.msra.mxu1 %v4150_v22 }
 0x17e   :  { %v1799_v29 = vpack.c.bf16 %v1740_v23, %v1739_v26  ;;  %vm800_vm15 = vcmp.eq.s32.totalorder %v4516_v50, %v736_v27  ;;  %vm352_vm0 = vcmp.eq.s32.totalorder %v4516_v50, %v288_v28 }
 0x17f   :  { %3810 = vmatmul.mubr.msk.f32.gmra.mrb[62].mxu0 %vm352_vm0, %v4179_v55  ;;  %3938 = vmatmul.mubr.msk.f32.gmra.mrb[62].mxu1 %vm800_vm15, %v4179_v55 }
 0x180   :  { %3942 = vmatprep.mubr.msk.bf16.mxu0 %vm1842_vm14, %v4935_v47 }
 0x182   :  { %v3733_v30 = vpop.f32.mrb[10].mxu0  ;;  %v3861_v31 = vpop.f32.mrb[10].mxu1 }
 0x183   :  { %v1742_v32 = vsub.f32 %v3733_v30, %v3861_v31  ;;  %v1061_v33 = vpop.f32.mrb[11].mxu0  ;;  %v1462_v34 = vpop.f32.mrb[11].mxu1  ;;  %3943 = vmatmul.mubr.msk.bf16.vlgmr.msra.gmra.mrb[64].mxu0 %vm1842_vm14, %v4943_v60 }
 0x184   :  { %v1741_v35 = vsub.f32 %v1061_v33, %v1462_v34  ;;  %3946 = vmatprep.mubr.msk.bf16.mxu0 %vm1842_vm14, %v1797_v7 }
 0x186   :  { %v1800_v36 = vpack.c.bf16 %v1742_v32, %v1741_v35 }
 0x18a   :  { %v3736_v50 = vpop.f32.mrb[12].mxu0  ;;  %v3864_v37 = vpop.f32.mrb[12].mxu1 }
 0x18b   :  { %v1744_v38 = vsub.f32 %v3736_v50, %v3864_v37  ;;  %v1071_v39 = vpop.f32.mrb[13].mxu0  ;;  %v1472_v55 = vpop.f32.mrb[13].mxu1  ;;  %3947 = vmatmul.mubr.msk.bf16.gmra.mrb[68].mxu0 %vm1842_vm14, %v1798_v18 }
 0x18c   :  { %v1743_v40 = vsub.f32 %v1071_v39, %v1472_v55  ;;  %3950 = vmatprep.mubr.msk.bf16.mxu0 %vm1842_vm14, %v1799_v29 }
 0x18e   :  { %v1801_v41 = vpack.c.bf16 %v1744_v38, %v1743_v40  ;;  %v4151_v40 = vld [vmem:[%s5235_s6 + $0x8] sm:$0xff]  }
 0x18f   :  { %4008 = vmatprep.subr.bf16.mxu1 %v4151_v40 }
 0x190   :  { %4009 = vmatpush3.bf16.msra.mxu1 %v4151_v40 }
 0x192   :  { %v3739_v42 = vpop.f32.mrb[14].mxu0  ;;  %v3867_v43 = vpop.f32.mrb[14].mxu1 }
 0x193   :  { %v1746_v44 = vsub.f32 %v3739_v42, %v3867_v43  ;;  %v1081_v45 = vpop.f32.mrb[15].mxu0  ;;  %v1482_v46 = vpop.f32.mrb[15].mxu1  ;;  %3951 = vmatmul.mubr.msk.bf16.gmra.mrb[72].mxu0 %vm1842_vm14, %v1800_v36  ;;  %v4152_v43 = vld [vmem:[%s5235_s6 + $0x10] sm:$0xff]  }
 0x194   :  { %v1745_v47 = vsub.f32 %v1081_v45, %v1482_v46  ;;  %3954 = vmatprep.mubr.msk.bf16.mxu0 %vm1842_vm14, %v1801_v41  ;;  %4010 = vmatprep.subr.bf16.mxu1 %v4152_v43 }
 0x195   :  { %4011 = vmatpush3.bf16.msra.mxu1 %v4152_v43 }
 0x196   :  { %v1802_v48 = vpack.c.bf16 %v1746_v44, %v1745_v47 }
 0x19a   :  { %v3742_v49 = vpop.f32.mrb[16].mxu0  ;;  %v3870_v51 = vpop.f32.mrb[16].mxu1 }
 0x19b   :  { %v1748_v52 = vsub.f32 %v3742_v49, %v3870_v51  ;;  %v1091_v53 = vpop.f32.mrb[17].mxu0  ;;  %v1492_v54 = vpop.f32.mrb[17].mxu1  ;;  %3955 = vmatmul.mubr.msk.bf16.gmra.mrb[76].mxu0 %vm1842_vm14, %v1802_v48  ;;  %v4153_v49 = vld [vmem:[%s5235_s6 + $0x18] sm:$0xff]  }
 0x19c   :  { %v1747_v56 = vsub.f32 %v1091_v53, %v1492_v54  ;;  %4012 = vmatprep.subr.bf16.mxu1 %v4153_v49 }
 0x19d   :  { %4013 = vmatpush3.bf16.msra.mxu1 %v4153_v49 }
 0x19e   :  { %v1803_v57 = vpack.c.bf16 %v1748_v52, %v1747_v56 }
 0x1a0   :  { %3958 = vmatprep.mubr.msk.bf16.mxu0 %vm1842_vm14, %v1803_v57 }
 0x1a2   :  { %v3745_v58 = vpop.f32.mrb[18].mxu0  ;;  %v3873_v59 = vpop.f32.mrb[18].mxu1 }
 0x1a3   :  { %v1750_v60 = vsub.f32 %v3745_v58, %v3873_v59  ;;  %v1101_v61 = vpop.f32.mrb[19].mxu0  ;;  %v1502_v62 = vpop.f32.mrb[19].mxu1 }
 0x1a4   :  { %v1749_v63 = vsub.f32 %v1101_v61, %v1502_v62 }
 0x1a6   :  { %v1804_v0 = vpack.c.bf16 %v1750_v60, %v1749_v63 }
 0x1a8   :  { %3959 = vmatmul.mubr.msk.bf16.gmra.mrb[80].mxu0 %vm1842_vm14, %v1804_v0 }
 0x1aa   :  { %v3748_v1 = vpop.f32.mrb[20].mxu0  ;;  %v3876_v2 = vpop.f32.mrb[20].mxu1 }
 0x1ab   :  { %v1752_v3 = vsub.f32 %v3748_v1, %v3876_v2  ;;  %v1111_v4 = vpop.f32.mrb[21].mxu0  ;;  %v1512_v5 = vpop.f32.mrb[21].mxu1 }
 0x1ac   :  { %v1751_v6 = vsub.f32 %v1111_v4, %v1512_v5 }
 0x1ae   :  { %v1805_v7 = vpack.c.bf16 %v1752_v3, %v1751_v6 }
 0x1b0   :  { %3962 = vmatprep.mubr.msk.bf16.mxu0 %vm1842_vm14, %v1805_v7 }
 0x1b2   :  { %v3751_v8 = vpop.f32.mrb[22].mxu0  ;;  %v3879_v9 = vpop.f32.mrb[22].mxu1 }
 0x1b3   :  { %v1754_v10 = vsub.f32 %v3751_v8, %v3879_v9  ;;  %v1121_v11 = vpop.f32.mrb[23].mxu0  ;;  %v1522_v12 = vpop.f32.mrb[23].mxu1 }
 0x1b4   :  { %v1753_v13 = vsub.f32 %v1121_v11, %v1522_v12 }
 0x1b6   :  { %v1806_v14 = vpack.c.bf16 %v1754_v10, %v1753_v13 }
 0x1b8   :  { %3963 = vmatmul.mubr.msk.bf16.gmra.mrb[84].mxu0 %vm1842_vm14, %v1806_v14 }
 0x1ba   :  { %v3754_v15 = vpop.f32.mrb[24].mxu0  ;;  %v3882_v16 = vpop.f32.mrb[24].mxu1 }
 0x1bb   :  { %v1756_v17 = vsub.f32 %v3754_v15, %v3882_v16  ;;  %v1131_v18 = vpop.f32.mrb[25].mxu0  ;;  %v1532_v19 = vpop.f32.mrb[25].mxu1 }
 0x1bc   :  { %v1755_v20 = vsub.f32 %v1131_v18, %v1532_v19 }
 0x1be   :  { %v1807_v21 = vpack.c.bf16 %v1756_v17, %v1755_v20 }
 0x1c0   :  { %3966 = vmatprep.mubr.msk.bf16.mxu0 %vm1842_vm14, %v1807_v21 }
 0x1c2   :  { %v3757_v23 = vpop.f32.mrb[26].mxu0  ;;  %v3885_v24 = vpop.f32.mrb[26].mxu1 }
 0x1c3   :  { %v1758_v25 = vsub.f32 %v3757_v23, %v3885_v24  ;;  %v1141_v26 = vpop.f32.mrb[27].mxu0  ;;  %v1542_v27 = vpop.f32.mrb[27].mxu1 }
 0x1c4   :  { %v1757_v28 = vsub.f32 %v1141_v26, %v1542_v27 }
 0x1c6   :  { %v1808_v29 = vpack.c.bf16 %v1758_v25, %v1757_v28 }
 0x1c8   :  { %3967 = vmatmul.mubr.msk.bf16.gmra.mrb[88].mxu0 %vm1842_vm14, %v1808_v29 }
 0x1ca   :  { %v3760_v30 = vpop.f32.mrb[28].mxu0  ;;  %v3888_v31 = vpop.f32.mrb[28].mxu1 }
 0x1cb   :  { %v1760_v32 = vsub.f32 %v3760_v30, %v3888_v31  ;;  %v1151_v33 = vpop.f32.mrb[29].mxu0  ;;  %v1552_v34 = vpop.f32.mrb[29].mxu1 }
 0x1cc   :  { %v1759_v35 = vsub.f32 %v1151_v33, %v1552_v34 }
 0x1ce   :  { %v1809_v36 = vpack.c.bf16 %v1760_v32, %v1759_v35 }
 0x1d0   :  { %3970 = vmatprep.mubr.msk.bf16.mxu0 %vm1842_vm14, %v1809_v36 }
 0x1d2   :  { %v3763_v50 = vpop.f32.mrb[30].mxu0  ;;  %v3891_v37 = vpop.f32.mrb[30].mxu1 }
 0x1d3   :  { %v1762_v38 = vsub.f32 %v3763_v50, %v3891_v37  ;;  %v1161_v39 = vpop.f32.mrb[31].mxu0  ;;  %v1562_v55 = vpop.f32.mrb[31].mxu1 }
 0x1d4   :  { %v1761_v41 = vsub.f32 %v1161_v39, %v1562_v55 }
 0x1d6   :  { %v1810_v42 = vpack.c.bf16 %v1762_v38, %v1761_v41 }
 0x1d8   :  { %3971 = vmatmul.mubr.msk.bf16.gmra.mrb[92].mxu0 %vm1842_vm14, %v1810_v42 }
 0x1da   :  { %v3766_v44 = vpop.f32.mrb[32].mxu0  ;;  %v3894_v45 = vpop.f32.mrb[32].mxu1 }
 0x1db   :  { %v1764_v46 = vsub.f32 %v3766_v44, %v3894_v45  ;;  %v1171_v47 = vpop.f32.mrb[33].mxu0  ;;  %v1572_v48 = vpop.f32.mrb[33].mxu1 }
 0x1dc   :  { %v1763_v51 = vsub.f32 %v1171_v47, %v1572_v48 }
 0x1de   :  { %v1811_v52 = vpack.c.bf16 %v1764_v46, %v1763_v51 }
 0x1e0   :  { %3974 = vmatprep.mubr.msk.bf16.mxu0 %vm1842_vm14, %v1811_v52 }
 0x1e2   :  { %v3769_v53 = vpop.f32.mrb[34].mxu0  ;;  %v3897_v54 = vpop.f32.mrb[34].mxu1 }
 0x1e3   :  { %v1766_v56 = vsub.f32 %v3769_v53, %v3897_v54  ;;  %v1181_v57 = vpop.f32.mrb[35].mxu0  ;;  %v1582_v58 = vpop.f32.mrb[35].mxu1 }
 0x1e4   :  { %v1765_v59 = vsub.f32 %v1181_v57, %v1582_v58 }
 0x1e6   :  { %v1812_v60 = vpack.c.bf16 %v1766_v56, %v1765_v59 }
 0x1e8   :  { %3975 = vmatmul.mubr.msk.bf16.gmra.mrb[96].mxu0 %vm1842_vm14, %v1812_v60 }
 0x1ea   :  { %v3772_v61 = vpop.f32.mrb[36].mxu0  ;;  %v3900_v62 = vpop.f32.mrb[36].mxu1 }
 0x1eb   :  { %v1768_v63 = vsub.f32 %v3772_v61, %v3900_v62  ;;  %v1191_v0 = vpop.f32.mrb[37].mxu0  ;;  %v1592_v1 = vpop.f32.mrb[37].mxu1 }
 0x1ec   :  { %v1767_v2 = vsub.f32 %v1191_v0, %v1592_v1 }
 0x1ee   :  { %v1813_v3 = vpack.c.bf16 %v1768_v63, %v1767_v2 }
 0x1f0   :  { %3978 = vmatprep.mubr.msk.bf16.mxu0 %vm1842_vm14, %v1813_v3 }
 0x1f2   :  { %v3775_v4 = vpop.f32.mrb[38].mxu0  ;;  %v3903_v5 = vpop.f32.mrb[38].mxu1 }
 0x1f3   :  { %v1770_v6 = vsub.f32 %v3775_v4, %v3903_v5  ;;  %v1201_v7 = vpop.f32.mrb[39].mxu0  ;;  %v1602_v8 = vpop.f32.mrb[39].mxu1 }
 0x1f4   :  { %v1769_v9 = vsub.f32 %v1201_v7, %v1602_v8 }
 0x1f6   :  { %v1814_v10 = vpack.c.bf16 %v1770_v6, %v1769_v9 }
 0x1f8   :  { %3979 = vmatmul.mubr.msk.bf16.gmra.mrb[100].mxu0 %vm1842_vm14, %v1814_v10 }
 0x1fa   :  { %v3778_v11 = vpop.f32.mrb[40].mxu0  ;;  %v3906_v12 = vpop.f32.mrb[40].mxu1 }
 0x1fb   :  { %v1772_v13 = vsub.f32 %v3778_v11, %v3906_v12  ;;  %v1211_v14 = vpop.f32.mrb[41].mxu0  ;;  %v1612_v15 = vpop.f32.mrb[41].mxu1 }
 0x1fc   :  { %v1771_v16 = vsub.f32 %v1211_v14, %v1612_v15 }
 0x1fe   :  { %v1815_v17 = vpack.c.bf16 %v1772_v13, %v1771_v16 }
 0x200   :  { %3982 = vmatprep.mubr.msk.bf16.mxu0 %vm1842_vm14, %v1815_v17 }
 0x202   :  { %v3781_v18 = vpop.f32.mrb[42].mxu0  ;;  %v3909_v19 = vpop.f32.mrb[42].mxu1 }
 0x203   :  { %v1774_v20 = vsub.f32 %v3781_v18, %v3909_v19  ;;  %v1221_v21 = vpop.f32.mrb[43].mxu0  ;;  %v1622_v22 = vpop.f32.mrb[43].mxu1 }
 0x204   :  { %v1773_v23 = vsub.f32 %v1221_v21, %v1622_v22 }
 0x206   :  { %v1816_v24 = vpack.c.bf16 %v1774_v20, %v1773_v23 }
 0x208   :  { %3983 = vmatmul.mubr.msk.bf16.gmra.mrb[104].mxu0 %vm1842_vm14, %v1816_v24 }
 0x20a   :  { %v3784_v25 = vpop.f32.mrb[44].mxu0  ;;  %v3912_v26 = vpop.f32.mrb[44].mxu1 }
 0x20b   :  { %v1776_v27 = vsub.f32 %v3784_v25, %v3912_v26  ;;  %v1231_v28 = vpop.f32.mrb[45].mxu0  ;;  %v1632_v29 = vpop.f32.mrb[45].mxu1 }
 0x20c   :  { %v1775_v30 = vsub.f32 %v1231_v28, %v1632_v29 }
 0x20e   :  { %v1817_v31 = vpack.c.bf16 %v1776_v27, %v1775_v30  ;;  %v5021_v30 = vld [vmem:[%s5234_s5] ss:$0 sm:$0xff] }
 0x210   :  { %3986 = vmatprep.mubr.msk.bf16.mxu0 %vm1842_vm14, %v1817_v31 }
 0x212   :  { %v3787_v32 = vpop.f32.mrb[46].mxu0  ;;  %v3915_v33 = vpop.f32.mrb[46].mxu1 }
 0x213   :  { %v1778_v34 = vsub.f32 %v3787_v32, %v3915_v33  ;;  %v1241_v35 = vpop.f32.mrb[47].mxu0  ;;  %v1642_v36 = vpop.f32.mrb[47].mxu1 }
 0x214   :  { %v1777_v50 = vsub.f32 %v1241_v35, %v1642_v36 }
 0x216   :  { %v1818_v37 = vpack.c.bf16 %v1778_v34, %v1777_v50 }
 0x218   :  { %3987 = vmatmul.mubr.msk.bf16.gmra.mrb[108].mxu0 %vm1842_vm14, %v1818_v37 }
 0x21a   :  { %v3790_v38 = vpop.f32.mrb[48].mxu0  ;;  %v3918_v39 = vpop.f32.mrb[48].mxu1 }
 0x21b   :  { %v1780_v55 = vsub.f32 %v3790_v38, %v3918_v39  ;;  %v1251_v40 = vpop.f32.mrb[49].mxu0  ;;  %v1652_v41 = vpop.f32.mrb[49].mxu1 }
 0x21c   :  { %v1779_v42 = vsub.f32 %v1251_v40, %v1652_v41 }
 0x21e   :  { %v1819_v43 = vpack.c.bf16 %v1780_v55, %v1779_v42 }
 0x220   :  { %3990 = vmatprep.mubr.msk.bf16.mxu0 %vm1842_vm14, %v1819_v43 }
 0x222   :  { %v3793_v44 = vpop.f32.mrb[50].mxu0  ;;  %v3921_v45 = vpop.f32.mrb[50].mxu1 }
 0x223   :  { %v1782_v46 = vsub.f32 %v3793_v44, %v3921_v45  ;;  %v1261_v47 = vpop.f32.mrb[51].mxu0  ;;  %v1662_v48 = vpop.f32.mrb[51].mxu1 }
 0x224   :  { %v1781_v49 = vsub.f32 %v1261_v47, %v1662_v48 }
 0x226   :  { %v1820_v51 = vpack.c.bf16 %v1782_v46, %v1781_v49 }
 0x228   :  { %3991 = vmatmul.mubr.msk.bf16.gmra.mrb[112].mxu0 %vm1842_vm14, %v1820_v51 }
 0x22a   :  { %v3796_v52 = vpop.f32.mrb[52].mxu0  ;;  %v3924_v53 = vpop.f32.mrb[52].mxu1 }
 0x22b   :  { %v1784_v54 = vsub.f32 %v3796_v52, %v3924_v53  ;;  %v1271_v56 = vpop.f32.mrb[53].mxu0  ;;  %v1672_v57 = vpop.f32.mrb[53].mxu1 }
 0x22c   :  { %v1783_v58 = vsub.f32 %v1271_v56, %v1672_v57 }
 0x22e   :  { %v1821_v59 = vpack.c.bf16 %v1784_v54, %v1783_v58 }
 0x230   :  { %3994 = vmatprep.mubr.msk.bf16.mxu0 %vm1842_vm14, %v1821_v59 }
 0x232   :  { %v3799_v60 = vpop.f32.mrb[54].mxu0  ;;  %v3927_v61 = vpop.f32.mrb[54].mxu1 }
 0x233   :  { %v1786_v62 = vsub.f32 %v3799_v60, %v3927_v61  ;;  %v1281_v63 = vpop.f32.mrb[55].mxu0  ;;  %v1682_v0 = vpop.f32.mrb[55].mxu1 }
 0x234   :  { %v1785_v1 = vsub.f32 %v1281_v63, %v1682_v0 }
 0x236   :  { %v1822_v2 = vpack.c.bf16 %v1786_v62, %v1785_v1 }
 0x238   :  { %3995 = vmatmul.mubr.msk.bf16.gmra.mrb[116].mxu0 %vm1842_vm14, %v1822_v2 }
 0x23a   :  { %v3802_v3 = vpop.f32.mrb[56].mxu0  ;;  %v3930_v4 = vpop.f32.mrb[56].mxu1 }
 0x23b   :  { %v1788_v5 = vsub.f32 %v3802_v3, %v3930_v4  ;;  %v1291_v6 = vpop.f32.mrb[57].mxu0  ;;  %v1692_v7 = vpop.f32.mrb[57].mxu1 }
 0x23c   :  { %v1787_v8 = vsub.f32 %v1291_v6, %v1692_v7 }
 0x23e   :  { %v1823_v9 = vpack.c.bf16 %v1788_v5, %v1787_v8 }
 0x240   :  { %3998 = vmatprep.mubr.msk.bf16.mxu0 %vm1842_vm14, %v1823_v9 }
 0x242   :  { %v3805_v10 = vpop.f32.mrb[58].mxu0  ;;  %v3933_v11 = vpop.f32.mrb[58].mxu1 }
 0x243   :  { %v1790_v12 = vsub.f32 %v3805_v10, %v3933_v11  ;;  %v1301_v13 = vpop.f32.mrb[59].mxu0  ;;  %v1702_v14 = vpop.f32.mrb[59].mxu1 }
 0x244   :  { %v1789_v15 = vsub.f32 %v1301_v13, %v1702_v14 }
 0x246   :  { %v1824_v16 = vpack.c.bf16 %v1790_v12, %v1789_v15 }
 0x248   :  { %3999 = vmatmul.mubr.msk.bf16.gmra.mrb[120].mxu0 %vm1842_vm14, %v1824_v16 }
 0x24a   :  { %v3808_v17 = vpop.f32.mrb[60].mxu0  ;;  %v3936_v18 = vpop.f32.mrb[60].mxu1 }
 0x24b   :  { %v1792_v19 = vsub.f32 %v3808_v17, %v3936_v18  ;;  %v1311_v20 = vpop.f32.mrb[61].mxu0  ;;  %v1712_v21 = vpop.f32.mrb[61].mxu1 }
 0x24c   :  { %v1791_v22 = vsub.f32 %v1311_v20, %v1712_v21 }
 0x24e   :  { %v1825_v23 = vpack.c.bf16 %v1792_v19, %v1791_v22 }
 0x250   :  { %4002 = vmatprep.mubr.msk.bf16.mxu0 %vm1842_vm14, %v1825_v23 }
 0x252   :  { %v3811_v24 = vpop.f32.mrb[62].mxu0  ;;  %v3939_v25 = vpop.f32.mrb[62].mxu1 }
 0x253   :  { %v1794_v26 = vsub.f32 %v3811_v24, %v3939_v25  ;;  %v1321_v27 = vpop.f32.mrb[63].mxu0  ;;  %v1722_v28 = vpop.f32.mrb[63].mxu1 }
 0x254   :  { %v1793_v29 = vsub.f32 %v1321_v27, %v1722_v28 }
 0x256   :  { %v1826_v31 = vpack.c.bf16 %v1794_v26, %v1793_v29  ;;  %v3944_v32 = vpop.f32.mrb[64].mxu0 }
 0x257   :  { %v1982_v33 = vadd.f32 %v3944_v32, %v5021_v30  ;;  %v1973_v34 = vpop.f32.mrb[65].mxu0 }
 0x258   :  { %v1974_v35 = vadd.f32 %v5021_v30, %v1973_v34  ;;  %v3945_v36 = vpop.f32.mrb[66].mxu0  ;;  %4003 = vmatmul.mubr.msk.bf16.gmra.mrb[124].mxu0 %vm1842_vm14, %v1826_v31 }
 0x259   :  { %v1985_v50 = vadd.f32 %v3945_v36, %v5021_v30  ;;  %v1976_v37 = vpop.f32.mrb[67].mxu0  ;;  %v2230_v39 = vmax.f32 %v1982_v33, 0.0 }
 0x25a   :  { %v1977_v38 = vadd.f32 %v5021_v30, %v1976_v37  ;;  %v2228_v40 = vmax.f32 %v1974_v35, 0.0 }
 0x25b   :  { %v2231_v55 = vmax.f32 %v1985_v50, 0.0 }
 0x25c   :  { %v2229_v41 = vmax.f32 %v1977_v38, 0.0 }
 0x25d   :  { %v2293_v42 = vpack.c.bf16 %v2231_v55, %v2230_v39 }
 0x25e   :  { %v2292_v43 = vpack.c.bf16 %v2229_v41, %v2228_v40  ;;  %v3948_v44 = vpop.f32.mrb[68].mxu0 }
 0x25f   :  { %v1998_v45 = vadd.f32 %v3948_v44, %v5021_v30  ;;  %v1989_v46 = vpop.f32.mrb[69].mxu0 }
 0x260   :  { %v1990_v47 = vadd.f32 %v5021_v30, %v1989_v46  ;;  %v3949_v48 = vpop.f32.mrb[70].mxu0  ;;  %4014 = vmatprep.mubr.msk.bf16.mxu1 %vm2363_vm1, %v2292_v43 }
 0x261   :  { %v2001_v49 = vadd.f32 %v3949_v48, %v5021_v30  ;;  %v1992_v51 = vpop.f32.mrb[71].mxu0  ;;  %4015 = vmatmul.mubr.msk.bf16.vlgmr.msra.gmra.mrb[64].mxu1 %vm2363_vm1, %v2293_v42  ;;  %v2234_v53 = vmax.f32 %v1998_v45, 0.0 }
 0x262   :  { %v1993_v52 = vadd.f32 %v5021_v30, %v1992_v51  ;;  %v2232_v56 = vmax.f32 %v1990_v47, 0.0 }
 0x263   :  { %v2235_v54 = vmax.f32 %v2001_v49, 0.0 }
 0x264   :  { %v2233_v57 = vmax.f32 %v1993_v52, 0.0 }
 0x265   :  { %v2295_v58 = vpack.c.bf16 %v2235_v54, %v2234_v53 }
 0x266   :  { %v2294_v59 = vpack.c.bf16 %v2233_v57, %v2232_v56  ;;  %v3952_v60 = vpop.f32.mrb[72].mxu0 }
 0x267   :  { %v2014_v61 = vadd.f32 %v3952_v60, %v5021_v30  ;;  %v2005_v62 = vpop.f32.mrb[73].mxu0 }
 0x268   :  { %v2006_v63 = vadd.f32 %v5021_v30, %v2005_v62  ;;  %v3953_v0 = vpop.f32.mrb[74].mxu0  ;;  %4018 = vmatprep.mubr.msk.bf16.mxu1 %vm2363_vm1, %v2294_v59 }
 0x269   :  { %v2017_v1 = vadd.f32 %v3953_v0, %v5021_v30  ;;  %v2008_v2 = vpop.f32.mrb[75].mxu0  ;;  %4019 = vmatmul.mubr.msk.bf16.gmra.mrb[68].mxu1 %vm2363_vm1, %v2295_v58  ;;  %v2238_v4 = vmax.f32 %v2014_v61, 0.0 }
 0x26a   :  { %v2009_v3 = vadd.f32 %v5021_v30, %v2008_v2  ;;  %v2236_v6 = vmax.f32 %v2006_v63, 0.0 }
 0x26b   :  { %v2239_v5 = vmax.f32 %v2017_v1, 0.0 }
 0x26c   :  { %v2237_v7 = vmax.f32 %v2009_v3, 0.0 }
 0x26d   :  { %v2297_v8 = vpack.c.bf16 %v2239_v5, %v2238_v4 }
 0x26e   :  { %v2296_v9 = vpack.c.bf16 %v2237_v7, %v2236_v6  ;;  %v3956_v10 = vpop.f32.mrb[76].mxu0 }
 0x26f   :  { %v2030_v11 = vadd.f32 %v3956_v10, %v5021_v30  ;;  %v2021_v12 = vpop.f32.mrb[77].mxu0 }
 0x270   :  { %v2022_v13 = vadd.f32 %v5021_v30, %v2021_v12  ;;  %v3957_v14 = vpop.f32.mrb[78].mxu0  ;;  %4022 = vmatprep.mubr.msk.bf16.mxu1 %vm2363_vm1, %v2296_v9 }
 0x271   :  { %v2033_v15 = vadd.f32 %v3957_v14, %v5021_v30  ;;  %v2024_v16 = vpop.f32.mrb[79].mxu0  ;;  %4023 = vmatmul.mubr.msk.bf16.gmra.mrb[72].mxu1 %vm2363_vm1, %v2297_v8  ;;  %v2242_v18 = vmax.f32 %v2030_v11, 0.0 }
 0x272   :  { %v2025_v17 = vadd.f32 %v5021_v30, %v2024_v16  ;;  %v2240_v20 = vmax.f32 %v2022_v13, 0.0 }
 0x273   :  { %v2243_v19 = vmax.f32 %v2033_v15, 0.0 }
 0x274   :  { %v2241_v21 = vmax.f32 %v2025_v17, 0.0 }
 0x275   :  { %v2299_v22 = vpack.c.bf16 %v2243_v19, %v2242_v18 }
 0x276   :  { %v2298_v23 = vpack.c.bf16 %v2241_v21, %v2240_v20 }
 0x278   :  { %4026 = vmatprep.mubr.msk.bf16.mxu1 %vm2363_vm1, %v2298_v23 }
 0x279   :  { %4027 = vmatmul.mubr.msk.bf16.gmra.mrb[76].mxu1 %vm2363_vm1, %v2299_v22 }
 0x27b   :  { %v3960_v24 = vpop.f32.mrb[80].mxu0 }
 0x27c   :  { %v2046_v25 = vadd.f32 %v3960_v24, %v5021_v30  ;;  %v2037_v26 = vpop.f32.mrb[81].mxu0 }
 0x27d   :  { %v2038_v27 = vadd.f32 %v5021_v30, %v2037_v26  ;;  %v3961_v28 = vpop.f32.mrb[82].mxu0 }
 0x27e   :  { %v2049_v29 = vadd.f32 %v3961_v28, %v5021_v30  ;;  %v2040_v31 = vpop.f32.mrb[83].mxu0  ;;  %v2246_v33 = vmax.f32 %v2046_v25, 0.0 }
 0x27f   :  { %v2041_v32 = vadd.f32 %v5021_v30, %v2040_v31  ;;  %v2244_v35 = vmax.f32 %v2038_v27, 0.0 }
 0x280   :  { %v2247_v34 = vmax.f32 %v2049_v29, 0.0 }
 0x281   :  { %v2245_v36 = vmax.f32 %v2041_v32, 0.0 }
 0x282   :  { %v2301_v50 = vpack.c.bf16 %v2247_v34, %v2246_v33 }
 0x283   :  { %v2300_v37 = vpack.c.bf16 %v2245_v36, %v2244_v35 }
 0x285   :  { %4030 = vmatprep.mubr.msk.bf16.mxu1 %vm2363_vm1, %v2300_v37 }
 0x286   :  { %4031 = vmatmul.mubr.msk.bf16.gmra.mrb[80].mxu1 %vm2363_vm1, %v2301_v50 }
 0x28b   :  { %v3964_v38 = vpop.f32.mrb[84].mxu0 }
 0x28c   :  { %v2062_v39 = vadd.f32 %v3964_v38, %v5021_v30  ;;  %v2053_v55 = vpop.f32.mrb[85].mxu0 }
 0x28d   :  { %v2054_v40 = vadd.f32 %v5021_v30, %v2053_v55  ;;  %v3965_v41 = vpop.f32.mrb[86].mxu0 }
 0x28e   :  { %v2065_v42 = vadd.f32 %v3965_v41, %v5021_v30  ;;  %v2056_v43 = vpop.f32.mrb[87].mxu0  ;;  %v2250_v45 = vmax.f32 %v2062_v39, 0.0 }
 0x28f   :  { %v2057_v44 = vadd.f32 %v5021_v30, %v2056_v43  ;;  %v2248_v47 = vmax.f32 %v2054_v40, 0.0 }
 0x290   :  { %v2251_v46 = vmax.f32 %v2065_v42, 0.0 }
 0x291   :  { %v2249_v48 = vmax.f32 %v2057_v44, 0.0 }
 0x292   :  { %v2303_v49 = vpack.c.bf16 %v2251_v46, %v2250_v45 }
 0x293   :  { %v2302_v51 = vpack.c.bf16 %v2249_v48, %v2248_v47 }
 0x295   :  { %4034 = vmatprep.mubr.msk.bf16.mxu1 %vm2363_vm1, %v2302_v51 }
 0x296   :  { %4035 = vmatmul.mubr.msk.bf16.gmra.mrb[84].mxu1 %vm2363_vm1, %v2303_v49 }
 0x29b   :  { %v3968_v52 = vpop.f32.mrb[88].mxu0 }
 0x29c   :  { %v2078_v53 = vadd.f32 %v3968_v52, %v5021_v30  ;;  %v2069_v54 = vpop.f32.mrb[89].mxu0 }
 0x29d   :  { %v2070_v56 = vadd.f32 %v5021_v30, %v2069_v54  ;;  %v3969_v57 = vpop.f32.mrb[90].mxu0 }
 0x29e   :  { %v2081_v58 = vadd.f32 %v3969_v57, %v5021_v30  ;;  %v2072_v59 = vpop.f32.mrb[91].mxu0  ;;  %v2254_v61 = vmax.f32 %v2078_v53, 0.0 }
 0x29f   :  { %v2073_v60 = vadd.f32 %v5021_v30, %v2072_v59  ;;  %v2252_v63 = vmax.f32 %v2070_v56, 0.0 }
 0x2a0   :  { %v2255_v62 = vmax.f32 %v2081_v58, 0.0 }
 0x2a1   :  { %v2253_v0 = vmax.f32 %v2073_v60, 0.0 }
 0x2a2   :  { %v2305_v1 = vpack.c.bf16 %v2255_v62, %v2254_v61 }
 0x2a3   :  { %v2304_v2 = vpack.c.bf16 %v2253_v0, %v2252_v63 }
 0x2a5   :  { %4038 = vmatprep.mubr.msk.bf16.mxu1 %vm2363_vm1, %v2304_v2 }
 0x2a6   :  { %4039 = vmatmul.mubr.msk.bf16.gmra.mrb[88].mxu1 %vm2363_vm1, %v2305_v1 }
 0x2ab   :  { %v3972_v3 = vpop.f32.mrb[92].mxu0 }
 0x2ac   :  { %v2094_v4 = vadd.f32 %v3972_v3, %v5021_v30  ;;  %v2085_v5 = vpop.f32.mrb[93].mxu0 }
 0x2ad   :  { %v2086_v6 = vadd.f32 %v5021_v30, %v2085_v5  ;;  %v3973_v7 = vpop.f32.mrb[94].mxu0 }
 0x2ae   :  { %v2097_v8 = vadd.f32 %v3973_v7, %v5021_v30  ;;  %v2088_v9 = vpop.f32.mrb[95].mxu0  ;;  %v2258_v11 = vmax.f32 %v2094_v4, 0.0 }
 0x2af   :  { %v2089_v10 = vadd.f32 %v5021_v30, %v2088_v9  ;;  %v2256_v13 = vmax.f32 %v2086_v6, 0.0 }
 0x2b0   :  { %v2259_v12 = vmax.f32 %v2097_v8, 0.0 }
 0x2b1   :  { %v2257_v14 = vmax.f32 %v2089_v10, 0.0 }
 0x2b2   :  { %v2307_v15 = vpack.c.bf16 %v2259_v12, %v2258_v11 }
 0x2b3   :  { %v2306_v16 = vpack.c.bf16 %v2257_v14, %v2256_v13 }
 0x2b5   :  { %4042 = vmatprep.mubr.msk.bf16.mxu1 %vm2363_vm1, %v2306_v16 }
 0x2b6   :  { %4043 = vmatmul.mubr.msk.bf16.gmra.mrb[92].mxu1 %vm2363_vm1, %v2307_v15 }
 0x2bb   :  { %v3976_v17 = vpop.f32.mrb[96].mxu0 }
 0x2bc   :  { %v2110_v18 = vadd.f32 %v3976_v17, %v5021_v30  ;;  %v2101_v19 = vpop.f32.mrb[97].mxu0 }
 0x2bd   :  { %v2102_v20 = vadd.f32 %v5021_v30, %v2101_v19  ;;  %v3977_v21 = vpop.f32.mrb[98].mxu0 }
 0x2be   :  { %v2113_v22 = vadd.f32 %v3977_v21, %v5021_v30  ;;  %v2104_v23 = vpop.f32.mrb[99].mxu0  ;;  %v2262_v25 = vmax.f32 %v2110_v18, 0.0 }
 0x2bf   :  { %v2105_v24 = vadd.f32 %v5021_v30, %v2104_v23  ;;  %v2260_v27 = vmax.f32 %v2102_v20, 0.0 }
 0x2c0   :  { %v2263_v26 = vmax.f32 %v2113_v22, 0.0 }
 0x2c1   :  { %v2261_v28 = vmax.f32 %v2105_v24, 0.0 }
 0x2c2   :  { %v2309_v29 = vpack.c.bf16 %v2263_v26, %v2262_v25 }
 0x2c3   :  { %v2308_v31 = vpack.c.bf16 %v2261_v28, %v2260_v27 }
 0x2c5   :  { %4046 = vmatprep.mubr.msk.bf16.mxu1 %vm2363_vm1, %v2308_v31 }
 0x2c6   :  { %4047 = vmatmul.mubr.msk.bf16.gmra.mrb[96].mxu1 %vm2363_vm1, %v2309_v29 }
 0x2cb   :  { %v3980_v32 = vpop.f32.mrb[100].mxu0 }
 0x2cc   :  { %v2126_v33 = vadd.f32 %v3980_v32, %v5021_v30  ;;  %v2117_v34 = vpop.f32.mrb[101].mxu0 }
 0x2cd   :  { %v2118_v35 = vadd.f32 %v5021_v30, %v2117_v34  ;;  %v3981_v36 = vpop.f32.mrb[102].mxu0 }
 0x2ce   :  { %v2129_v50 = vadd.f32 %v3981_v36, %v5021_v30  ;;  %v2120_v37 = vpop.f32.mrb[103].mxu0  ;;  %v2266_v39 = vmax.f32 %v2126_v33, 0.0 }
 0x2cf   :  { %v2121_v38 = vadd.f32 %v5021_v30, %v2120_v37  ;;  %v2264_v40 = vmax.f32 %v2118_v35, 0.0 }
 0x2d0   :  { %v2267_v55 = vmax.f32 %v2129_v50, 0.0 }
 0x2d1   :  { %v2265_v41 = vmax.f32 %v2121_v38, 0.0 }
 0x2d2   :  { %v2311_v42 = vpack.c.bf16 %v2267_v55, %v2266_v39 }
 0x2d3   :  { %v2310_v43 = vpack.c.bf16 %v2265_v41, %v2264_v40 }
 0x2d5   :  { %4050 = vmatprep.mubr.msk.bf16.mxu1 %vm2363_vm1, %v2310_v43 }
 0x2d6   :  { %4051 = vmatmul.mubr.msk.bf16.gmra.mrb[100].mxu1 %vm2363_vm1, %v2311_v42 }
 0x2db   :  { %v3984_v44 = vpop.f32.mrb[104].mxu0 }
 0x2dc   :  { %v2142_v45 = vadd.f32 %v3984_v44, %v5021_v30  ;;  %v2133_v46 = vpop.f32.mrb[105].mxu0 }
 0x2dd   :  { %v2134_v47 = vadd.f32 %v5021_v30, %v2133_v46  ;;  %v3985_v48 = vpop.f32.mrb[106].mxu0 }
 0x2de   :  { %v2145_v49 = vadd.f32 %v3985_v48, %v5021_v30  ;;  %v2136_v51 = vpop.f32.mrb[107].mxu0  ;;  %v2270_v53 = vmax.f32 %v2142_v45, 0.0 }
 0x2df   :  { %v2137_v52 = vadd.f32 %v5021_v30, %v2136_v51  ;;  %v2268_v56 = vmax.f32 %v2134_v47, 0.0 }
 0x2e0   :  { %v2271_v54 = vmax.f32 %v2145_v49, 0.0 }
 0x2e1   :  { %v2269_v57 = vmax.f32 %v2137_v52, 0.0 }
 0x2e2   :  { %v2313_v58 = vpack.c.bf16 %v2271_v54, %v2270_v53 }
 0x2e3   :  { %v2312_v59 = vpack.c.bf16 %v2269_v57, %v2268_v56 }
 0x2e5   :  { %4054 = vmatprep.mubr.msk.bf16.mxu1 %vm2363_vm1, %v2312_v59 }
 0x2e6   :  { %4055 = vmatmul.mubr.msk.bf16.gmra.mrb[104].mxu1 %vm2363_vm1, %v2313_v58 }
 0x2eb   :  { %v3988_v60 = vpop.f32.mrb[108].mxu0 }
 0x2ec   :  { %v2158_v61 = vadd.f32 %v3988_v60, %v5021_v30  ;;  %v2149_v62 = vpop.f32.mrb[109].mxu0 }
 0x2ed   :  { %v2150_v63 = vadd.f32 %v5021_v30, %v2149_v62  ;;  %v3989_v0 = vpop.f32.mrb[110].mxu0 }
 0x2ee   :  { %v2161_v1 = vadd.f32 %v3989_v0, %v5021_v30  ;;  %v2152_v2 = vpop.f32.mrb[111].mxu0  ;;  %v2274_v4 = vmax.f32 %v2158_v61, 0.0 }
 0x2ef   :  { %v2153_v3 = vadd.f32 %v5021_v30, %v2152_v2  ;;  %v2272_v6 = vmax.f32 %v2150_v63, 0.0  ;;  %v5121_v2 = vld [vmem:[%s5236_s7] ss:$0 sm:$0xff]  ;;  %s4180_s7 = smov [#allocation2]  }
 0x2f0   :  { %v2275_v5 = vmax.f32 %v2161_v1, 0.0  ;;  %s3117_s3 = sshll.u32 %s4180_s7, 4  ;;  %s3118_s3 = int_to_ptr.vmem [resolvable:$true] %s3117_s3 }
 0x2f1   :  { %v2273_v7 = vmax.f32 %v2153_v3, 0.0  ;;  %s4154_s28 = scalar_lea.vmem %s3118_s3, 512  ;;  %p4159_p1 = scmp.lt.s32.totalorder %s3118_s3, %s3118_s3 }
 0x2f2   :  { %v2315_v8 = vpack.c.bf16 %v2275_v5, %v2274_v4  ;;  %p4155_p0 = scmp.ne.s32.totalorder %s3118_s3, %s4154_s28  ;;  %p4160_p2 = scmp.lt.s32.totalorder %s4154_s28, %s4154_s28 }
 0x2f3   :  { %v2314_v9 = vpack.c.bf16 %v2273_v7, %v2272_v6 }
 0x2f4   :  { %p4161_p3 = por %p4160_p2, %p4159_p1 }
 0x2f5   :  { %4058 = vmatprep.mubr.msk.bf16.mxu1 %vm2363_vm1, %v2314_v9 }
 0x2f6   :  { %4059 = vmatmul.mubr.msk.bf16.gmra.mrb[108].mxu1 %vm2363_vm1, %v2315_v8  ;;  %p4162_p4 = pnand %p4161_p3, %p4155_p0 }
 0x2fb   :  { %v3992_v10 = vpop.f32.mrb[112].mxu0 }
 0x2fc   :  { %v2174_v11 = vadd.f32 %v3992_v10, %v5021_v30  ;;  %v2165_v12 = vpop.f32.mrb[113].mxu0 }
 0x2fd   :  { %v2166_v13 = vadd.f32 %v5021_v30, %v2165_v12  ;;  %v3993_v14 = vpop.f32.mrb[114].mxu0 }
 0x2fe   :  { %v2177_v15 = vadd.f32 %v3993_v14, %v5021_v30  ;;  %v2168_v16 = vpop.f32.mrb[115].mxu0  ;;  %v2278_v18 = vmax.f32 %v2174_v11, 0.0 }
 0x2ff   :  { %v2169_v17 = vadd.f32 %v5021_v30, %v2168_v16  ;;  %v2276_v20 = vmax.f32 %v2166_v13, 0.0 }
 0x300   :  { %v2279_v19 = vmax.f32 %v2177_v15, 0.0 }
 0x301   :  { %v2277_v21 = vmax.f32 %v2169_v17, 0.0 }
 0x302   :  { %v2317_v22 = vpack.c.bf16 %v2279_v19, %v2278_v18 }
 0x303   :  { %v2316_v23 = vpack.c.bf16 %v2277_v21, %v2276_v20 }
 0x305   :  { %4062 = vmatprep.mubr.msk.bf16.mxu1 %vm2363_vm1, %v2316_v23 }
 0x306   :  { %4063 = vmatmul.mubr.msk.bf16.gmra.mrb[112].mxu1 %vm2363_vm1, %v2317_v22 }
 0x30b   :  { %v3996_v24 = vpop.f32.mrb[116].mxu0 }
 0x30c   :  { %v2190_v25 = vadd.f32 %v3996_v24, %v5021_v30  ;;  %v2181_v26 = vpop.f32.mrb[117].mxu0 }
 0x30d   :  { %v2182_v27 = vadd.f32 %v5021_v30, %v2181_v26  ;;  %v3997_v28 = vpop.f32.mrb[118].mxu0 }
 0x30e   :  { %v2193_v29 = vadd.f32 %v3997_v28, %v5021_v30  ;;  %v2184_v31 = vpop.f32.mrb[119].mxu0  ;;  %v2282_v33 = vmax.f32 %v2190_v25, 0.0 }
 0x30f   :  { %v2185_v32 = vadd.f32 %v5021_v30, %v2184_v31  ;;  %v2280_v35 = vmax.f32 %v2182_v27, 0.0 }
 0x310   :  { %v2283_v34 = vmax.f32 %v2193_v29, 0.0 }
 0x311   :  { %v2281_v36 = vmax.f32 %v2185_v32, 0.0 }
 0x312   :  { %v2319_v50 = vpack.c.bf16 %v2283_v34, %v2282_v33 }
 0x313   :  { %v2318_v37 = vpack.c.bf16 %v2281_v36, %v2280_v35 }
 0x315   :  { %4066 = vmatprep.mubr.msk.bf16.mxu1 %vm2363_vm1, %v2318_v37 }
 0x316   :  { %4067 = vmatmul.mubr.msk.bf16.gmra.mrb[116].mxu1 %vm2363_vm1, %v2319_v50 }
 0x31b   :  { %v4000_v38 = vpop.f32.mrb[120].mxu0 }
 0x31c   :  { %v2206_v39 = vadd.f32 %v4000_v38, %v5021_v30  ;;  %v2197_v55 = vpop.f32.mrb[121].mxu0 }
 0x31d   :  { %v2198_v40 = vadd.f32 %v5021_v30, %v2197_v55  ;;  %v4001_v41 = vpop.f32.mrb[122].mxu0 }
 0x31e   :  { %v2209_v42 = vadd.f32 %v4001_v41, %v5021_v30  ;;  %v2200_v43 = vpop.f32.mrb[123].mxu0  ;;  %v2286_v45 = vmax.f32 %v2206_v39, 0.0 }
 0x31f   :  { %v2201_v44 = vadd.f32 %v5021_v30, %v2200_v43  ;;  %v2284_v47 = vmax.f32 %v2198_v40, 0.0 }
 0x320   :  { %v2287_v46 = vmax.f32 %v2209_v42, 0.0 }
 0x321   :  { %v2285_v48 = vmax.f32 %v2201_v44, 0.0 }
 0x322   :  { %v2321_v49 = vpack.c.bf16 %v2287_v46, %v2286_v45 }
 0x323   :  { %v2320_v51 = vpack.c.bf16 %v2285_v48, %v2284_v47 }
 0x325   :  { %4070 = vmatprep.mubr.msk.bf16.mxu1 %vm2363_vm1, %v2320_v51 }
 0x326   :  { %4071 = vmatmul.mubr.msk.bf16.gmra.mrb[120].mxu1 %vm2363_vm1, %v2321_v49 }
 0x32b   :  { %v4004_v52 = vpop.f32.mrb[124].mxu0 }
 0x32c   :  { %v2222_v53 = vadd.f32 %v4004_v52, %v5021_v30  ;;  %v2213_v54 = vpop.f32.mrb[125].mxu0 }
 0x32d   :  { %v2214_v56 = vadd.f32 %v5021_v30, %v2213_v54  ;;  %v4005_v57 = vpop.f32.mrb[126].mxu0 }
 0x32e   :  { %v2225_v58 = vadd.f32 %v4005_v57, %v5021_v30  ;;  %v2216_v59 = vpop.f32.mrb[127].mxu0  ;;  %v2290_v61 = vmax.f32 %v2222_v53, 0.0 }
 0x32f   :  { %v2217_v60 = vadd.f32 %v5021_v30, %v2216_v59  ;;  %v2288_v63 = vmax.f32 %v2214_v56, 0.0 }
 0x330   :  { %v2291_v62 = vmax.f32 %v2225_v58, 0.0 }
 0x331   :  { %v2289_v0 = vmax.f32 %v2217_v60, 0.0 }
 0x332   :  { %v2323_v1 = vpack.c.bf16 %v2291_v62, %v2290_v61 }
 0x333   :  { %v2322_v3 = vpack.c.bf16 %v2289_v0, %v2288_v63 }
 0x334   :  { %v4016_v4 = vpop.f32.mrb[64].mxu1 }
 0x335   :  { %v2503_v5 = vadd.f32 %v4016_v4, %v5121_v2  ;;  %v2494_v6 = vpop.f32.mrb[65].mxu1  ;;  %4074 = vmatprep.mubr.msk.bf16.mxu1 %vm2363_vm1, %v2322_v3 }
 0x336   :  { %v2495_v7 = vadd.f32 %v5121_v2, %v2494_v6  ;;  %v4017_v30 = vpop.f32.mrb[66].mxu1  ;;  %4075 = vmatmul.mubr.msk.bf16.gmra.mrb[124].mxu1 %vm2363_vm1, %v2323_v1 }
 0x337   :  { %v2506_v8 = vadd.f32 %v4017_v30, %v5121_v2  ;;  %v2497_v9 = vpop.f32.mrb[67].mxu1  ;;  %v2751_v11 = vmax.f32 %v2503_v5, 0.0 }
 0x338   :  { %v2498_v10 = vadd.f32 %v5121_v2, %v2497_v9  ;;  %v2749_v13 = vmax.f32 %v2495_v7, 0.0 }
 0x339   :  { %v2752_v12 = vmax.f32 %v2506_v8, 0.0 }
 0x33a   :  { %v2750_v14 = vmax.f32 %v2498_v10, 0.0 }
 0x33b   :  { %v2820_v15 = vmax.f32 %v2751_v11, %v2752_v12 }
 0x33c   :  { %v2813_v16 = vmax.f32 %v2749_v13, %v2750_v14  ;;  %v4020_v17 = vpop.f32.mrb[68].mxu1 }
 0x33d   :  { %v2821_v18 = vrot.slane %v2820_v15, 4  ;;  %v2519_v19 = vadd.f32 %v4020_v17, %v5121_v2  ;;  %v2510_v20 = vpop.f32.mrb[69].mxu1 }
 0x33e   :  { %v2814_v21 = vrot.slane %v2813_v16, 4  ;;  %v2511_v22 = vadd.f32 %v5121_v2, %v2510_v20  ;;  %v4021_v23 = vpop.f32.mrb[70].mxu1 }
 0x33f   :  { %v2822_v24 = vmax.f32 %v2820_v15, %v2821_v18  ;;  %v2522_v25 = vadd.f32 %v4021_v23, %v5121_v2  ;;  %v2513_v26 = vpop.f32.mrb[71].mxu1  ;;  %v2755_v31 = vmax.f32 %v2519_v19, 0.0 }
 0x340   :  { %v2815_v27 = vmax.f32 %v2813_v16, %v2814_v21  ;;  %v2514_v28 = vadd.f32 %v5121_v2, %v2513_v26  ;;  %v2753_v34 = vmax.f32 %v2511_v22, 0.0 }
 0x341   :  { %v2823_v29 = vrot.slane %v2822_v24, 2  ;;  %v2756_v32 = vmax.f32 %v2522_v25, 0.0 }
 0x342   :  { %v2816_v33 = vrot.slane %v2815_v27, 2  ;;  %v2754_v35 = vmax.f32 %v2514_v28, 0.0 }
 0x343   :  { %v2824_v36 = vmax.f32 %v2822_v24, %v2823_v29  ;;  %v2834_v50 = vmax.f32 %v2755_v31, %v2756_v32 }
 0x344   :  { %v2817_v37 = vmax.f32 %v2815_v27, %v2816_v33  ;;  %v2827_v38 = vmax.f32 %v2753_v34, %v2754_v35  ;;  %v4024_v39 = vpop.f32.mrb[72].mxu1 }
 0x345   :  { %v2825_v55 = vrot.slane %v2824_v36, 1  ;;  %v2835_v40 = vrot.slane %v2834_v50, 4  ;;  %v2535_v41 = vadd.f32 %v4024_v39, %v5121_v2  ;;  %v2526_v42 = vpop.f32.mrb[73].mxu1 }
 0x346   :  { %v2818_v43 = vrot.slane %v2817_v37, 1  ;;  %v2828_v44 = vrot.slane %v2827_v38, 4  ;;  %v2527_v45 = vadd.f32 %v5121_v2, %v2526_v42  ;;  %v4025_v46 = vpop.f32.mrb[74].mxu1 }
 0x347   :  { %v2826_v47 = vmax.f32 %v2824_v36, %v2825_v55  ;;  %v2836_v48 = vmax.f32 %v2834_v50, %v2835_v40  ;;  %v2538_v49 = vadd.f32 %v4025_v46, %v5121_v2  ;;  %v2529_v51 = vpop.f32.mrb[75].mxu1  ;;  %v2759_v57 = vmax.f32 %v2535_v41, 0.0 }
 0x348   :  { %v2819_v52 = vmax.f32 %v2817_v37, %v2818_v43  ;;  %v2829_v53 = vmax.f32 %v2827_v38, %v2828_v44  ;;  %v2530_v54 = vadd.f32 %v5121_v2, %v2529_v51  ;;  %v2757_v61 = vmax.f32 %v2527_v45, 0.0 }
 0x349   :  { %v2837_v56 = vrot.slane %v2836_v48, 2  ;;  %v2760_v58 = vmax.f32 %v2538_v49, 0.0 }
 0x34a   :  { %v3070_v59 = vsel %vm3069_vm2, %v2826_v47, %v2819_v52  ;;  %v2830_v60 = vrot.slane %v2829_v53, 2  ;;  %v2758_v62 = vmax.f32 %v2530_v54, 0.0 }
 0x34b   :  { %v2838_v63 = vmax.f32 %v2836_v48, %v2837_v56  ;;  %v2848_v0 = vmax.f32 %v2759_v57, %v2760_v58 }
 0x34c   :  { %v2831_v1 = vmax.f32 %v2829_v53, %v2830_v60  ;;  %v2841_v3 = vmax.f32 %v2757_v61, %v2758_v62  ;;  %v4028_v4 = vpop.f32.mrb[76].mxu1 }
 0x34d   :  { %v2839_v5 = vrot.slane %v2838_v63, 1  ;;  %v2849_v6 = vrot.slane %v2848_v0, 4  ;;  %v2551_v7 = vadd.f32 %v4028_v4, %v5121_v2  ;;  %v2542_v30 = vpop.f32.mrb[77].mxu1 }
 0x34e   :  { %v2832_v8 = vrot.slane %v2831_v1, 1  ;;  %v2842_v9 = vrot.slane %v2841_v3, 4  ;;  %v2543_v10 = vadd.f32 %v5121_v2, %v2542_v30  ;;  %v4029_v11 = vpop.f32.mrb[78].mxu1 }
 0x34f   :  { %v2850_v12 = vmax.f32 %v2848_v0, %v2849_v6  ;;  %v2554_v13 = vadd.f32 %v4029_v11, %v5121_v2  ;;  %v2545_v14 = vpop.f32.mrb[79].mxu1  ;;  %v2840_v18 = vmax.f32 %v2838_v63, %v2839_v5  ;;  %v2763_v20 = vmax.f32 %v2551_v7, 0.0 }
 0x350   :  { %v2833_v15 = vmax.f32 %v2831_v1, %v2832_v8  ;;  %v2843_v16 = vmax.f32 %v2841_v3, %v2842_v9  ;;  %v2546_v17 = vadd.f32 %v5121_v2, %v2545_v14  ;;  %v2761_v24 = vmax.f32 %v2543_v10, 0.0 }
 0x351   :  { %v2851_v19 = vrot.slane %v2850_v12, 2  ;;  %v2764_v21 = vmax.f32 %v2554_v13, 0.0 }
 0x352   :  { %v3072_v22 = vsel %vm3071_vm3, %v2833_v15, %v3070_v59  ;;  %v2844_v23 = vrot.slane %v2843_v16, 2  ;;  %v2762_v25 = vmax.f32 %v2546_v17, 0.0 }
 0x353   :  { %v2852_v26 = vmax.f32 %v2850_v12, %v2851_v19  ;;  %v3074_v27 = vsel %vm3073_vm4, %v2840_v18, %v3072_v22  ;;  %v2862_v28 = vmax.f32 %v2763_v20, %v2764_v21 }
 0x354   :  { %v2845_v29 = vmax.f32 %v2843_v16, %v2844_v23  ;;  %v2855_v31 = vmax.f32 %v2761_v24, %v2762_v25 }
 0x355   :  { %v2853_v32 = vrot.slane %v2852_v26, 1  ;;  %v2863_v33 = vrot.slane %v2862_v28, 4 }
 0x356   :  { %v2846_v34 = vrot.slane %v2845_v29, 1  ;;  %v2856_v35 = vrot.slane %v2855_v31, 4 }
 0x357   :  { %v2864_v36 = vmax.f32 %v2862_v28, %v2863_v33  ;;  %v2854_v38 = vmax.f32 %v2852_v26, %v2853_v32 }
 0x358   :  { %v2847_v50 = vmax.f32 %v2845_v29, %v2846_v34  ;;  %v2857_v37 = vmax.f32 %v2855_v31, %v2856_v35 }
 0x359   :  { %v2865_v39 = vrot.slane %v2864_v36, 2  ;;  %v4032_v55 = vpop.f32.mrb[80].mxu1 }
 0x35a   :  { %v3076_v40 = vsel %vm3075_vm5, %v2847_v50, %v3074_v27  ;;  %v2858_v41 = vrot.slane %v2857_v37, 2  ;;  %v2567_v42 = vadd.f32 %v4032_v55, %v5121_v2  ;;  %v2558_v43 = vpop.f32.mrb[81].mxu1 }
 0x35b   :  { %v2866_v44 = vmax.f32 %v2864_v36, %v2865_v39  ;;  %v3078_v45 = vsel %vm3077_vm6, %v2854_v38, %v3076_v40  ;;  %v2559_v46 = vadd.f32 %v5121_v2, %v2558_v43  ;;  %v4033_v47 = vpop.f32.mrb[82].mxu1 }
 0x35c   :  { %v2859_v48 = vmax.f32 %v2857_v37, %v2858_v41  ;;  %v2570_v49 = vadd.f32 %v4033_v47, %v5121_v2  ;;  %v2561_v51 = vpop.f32.mrb[83].mxu1  ;;  %v2767_v56 = vmax.f32 %v2567_v42, 0.0 }
 0x35d   :  { %v2867_v52 = vrot.slane %v2866_v44, 1  ;;  %v2562_v53 = vadd.f32 %v5121_v2, %v2561_v51  ;;  %v2765_v58 = vmax.f32 %v2559_v46, 0.0 }
 0x35e   :  { %v2860_v54 = vrot.slane %v2859_v48, 1  ;;  %v2768_v57 = vmax.f32 %v2570_v49, 0.0 }
 0x35f   :  { %v2766_v59 = vmax.f32 %v2562_v53, 0.0  ;;  %v2868_v62 = vmax.f32 %v2866_v44, %v2867_v52 }
 0x360   :  { %v2861_v60 = vmax.f32 %v2859_v48, %v2860_v54  ;;  %v2876_v61 = vmax.f32 %v2767_v56, %v2768_v57 }
 0x361   :  { %v2869_v63 = vmax.f32 %v2765_v58, %v2766_v59 }
 0x362   :  { %v3080_v0 = vsel %vm3079_vm7, %v2861_v60, %v3078_v45  ;;  %v2877_v1 = vrot.slane %v2876_v61, 4 }
 0x363   :  { %v2870_v3 = vrot.slane %v2869_v63, 4  ;;  %v3082_v4 = vsel %vm3081_vm8, %v2868_v62, %v3080_v0 }
 0x364   :  { %v2878_v5 = vmax.f32 %v2876_v61, %v2877_v1  ;;  %3108 = vst [vmem:[#allocation2] sm:$0xff] %v3082_v4 }
 0x365   :  { %v2871_v6 = vmax.f32 %v2869_v63, %v2870_v3 }
 0x366   :  { %v2879_v7 = vrot.slane %v2878_v5, 2 }
 0x367   :  { %v2872_v30 = vrot.slane %v2871_v6, 2 }
 0x368   :  { %v2880_v8 = vmax.f32 %v2878_v5, %v2879_v7 }
 0x369   :  { %v2873_v9 = vmax.f32 %v2871_v6, %v2872_v30  ;;  %v4036_v10 = vpop.f32.mrb[84].mxu1 }
 0x36a   :  { %v2881_v11 = vrot.slane %v2880_v8, 1  ;;  %v2583_v12 = vadd.f32 %v4036_v10, %v5121_v2  ;;  %v2574_v13 = vpop.f32.mrb[85].mxu1 }
 0x36b   :  { %v2874_v14 = vrot.slane %v2873_v9, 1  ;;  %v2575_v15 = vadd.f32 %v5121_v2, %v2574_v13  ;;  %v4037_v16 = vpop.f32.mrb[86].mxu1 }
 0x36c   :  { %v2882_v17 = vmax.f32 %v2880_v8, %v2881_v11  ;;  %v2586_v18 = vadd.f32 %v4037_v16, %v5121_v2  ;;  %v2577_v19 = vpop.f32.mrb[87].mxu1  ;;  %v2771_v22 = vmax.f32 %v2583_v12, 0.0 }
 0x36d   :  { %v2875_v20 = vmax.f32 %v2873_v9, %v2874_v14  ;;  %v2578_v21 = vadd.f32 %v5121_v2, %v2577_v19  ;;  %v2769_v25 = vmax.f32 %v2575_v15, 0.0 }
 0x36e   :  { %v2772_v23 = vmax.f32 %v2586_v18, 0.0 }
 0x36f   :  { %v3083_v24 = vsel %vm3069_vm2, %v2882_v17, %v2875_v20  ;;  %v2770_v26 = vmax.f32 %v2578_v21, 0.0 }
 0x370   :  { %v2890_v27 = vmax.f32 %v2771_v22, %v2772_v23 }
 0x371   :  { %v2883_v28 = vmax.f32 %v2769_v25, %v2770_v26 }
 0x372   :  { %v2891_v29 = vrot.slane %v2890_v27, 4 }
 0x373   :  { %v2884_v31 = vrot.slane %v2883_v28, 4 }
 0x374   :  { %v2892_v32 = vmax.f32 %v2890_v27, %v2891_v29 }
 0x375   :  { %v2885_v33 = vmax.f32 %v2883_v28, %v2884_v31 }
 0x376   :  { %v2893_v34 = vrot.slane %v2892_v32, 2 }
 0x377   :  { %v2886_v35 = vrot.slane %v2885_v33, 2 }
 0x378   :  { %v2894_v36 = vmax.f32 %v2892_v32, %v2893_v34 }
 0x379   :  { %v2887_v50 = vmax.f32 %v2885_v33, %v2886_v35  ;;  %v4040_v37 = vpop.f32.mrb[88].mxu1 }
 0x37a   :  { %v2895_v38 = vrot.slane %v2894_v36, 1  ;;  %v2599_v39 = vadd.f32 %v4040_v37, %v5121_v2  ;;  %v2590_v55 = vpop.f32.mrb[89].mxu1 }
 0x37b   :  { %v2888_v40 = vrot.slane %v2887_v50, 1  ;;  %v2591_v41 = vadd.f32 %v5121_v2, %v2590_v55  ;;  %v4041_v42 = vpop.f32.mrb[90].mxu1 }
 0x37c   :  { %v2602_v43 = vadd.f32 %v4041_v42, %v5121_v2  ;;  %v2593_v44 = vpop.f32.mrb[91].mxu1  ;;  %v2896_v47 = vmax.f32 %v2894_v36, %v2895_v38  ;;  %v2775_v48 = vmax.f32 %v2599_v39, 0.0 }
 0x37d   :  { %v2889_v45 = vmax.f32 %v2887_v50, %v2888_v40  ;;  %v2594_v46 = vadd.f32 %v5121_v2, %v2593_v44  ;;  %v2773_v52 = vmax.f32 %v2591_v41, 0.0 }
 0x37e   :  { %v2776_v49 = vmax.f32 %v2602_v43, 0.0 }
 0x37f   :  { %v3084_v51 = vsel %vm3071_vm3, %v2889_v45, %v3083_v24  ;;  %v2774_v53 = vmax.f32 %v2594_v46, 0.0 }
 0x380   :  { %v2904_v54 = vmax.f32 %v2775_v48, %v2776_v49  ;;  %v3085_v56 = vsel %vm3073_vm4, %v2896_v47, %v3084_v51 }
 0x381   :  { %v2897_v57 = vmax.f32 %v2773_v52, %v2774_v53 }
 0x382   :  { %v2905_v58 = vrot.slane %v2904_v54, 4 }
 0x383   :  { %v2898_v59 = vrot.slane %v2897_v57, 4 }
 0x384   :  { %v2906_v60 = vmax.f32 %v2904_v54, %v2905_v58 }
 0x385   :  { %v2899_v61 = vmax.f32 %v2897_v57, %v2898_v59 }
 0x386   :  { %v2907_v62 = vrot.slane %v2906_v60, 2 }
 0x387   :  { %v2900_v63 = vrot.slane %v2899_v61, 2 }
 0x388   :  { %v2908_v0 = vmax.f32 %v2906_v60, %v2907_v62 }
 0x389   :  { %v2901_v1 = vmax.f32 %v2899_v61, %v2900_v63  ;;  %v4044_v3 = vpop.f32.mrb[92].mxu1 }
 0x38a   :  { %v2909_v4 = vrot.slane %v2908_v0, 1  ;;  %v2615_v5 = vadd.f32 %v4044_v3, %v5121_v2  ;;  %v2606_v6 = vpop.f32.mrb[93].mxu1 }
 0x38b   :  { %v2902_v7 = vrot.slane %v2901_v1, 1  ;;  %v2607_v30 = vadd.f32 %v5121_v2, %v2606_v6  ;;  %v4045_v8 = vpop.f32.mrb[94].mxu1 }
 0x38c   :  { %v2618_v9 = vadd.f32 %v4045_v8, %v5121_v2  ;;  %v2609_v10 = vpop.f32.mrb[95].mxu1  ;;  %v2910_v13 = vmax.f32 %v2908_v0, %v2909_v4  ;;  %v2779_v14 = vmax.f32 %v2615_v5, 0.0 }
 0x38d   :  { %v2903_v11 = vmax.f32 %v2901_v1, %v2902_v7  ;;  %v2610_v12 = vadd.f32 %v5121_v2, %v2609_v10  ;;  %v2777_v17 = vmax.f32 %v2607_v30, 0.0 }
 0x38e   :  { %v2780_v15 = vmax.f32 %v2618_v9, 0.0 }
 0x38f   :  { %v3086_v16 = vsel %vm3075_vm5, %v2903_v11, %v3085_v56  ;;  %v2778_v18 = vmax.f32 %v2610_v12, 0.0 }
 0x390   :  { %v2918_v19 = vmax.f32 %v2779_v14, %v2780_v15  ;;  %v3087_v20 = vsel %vm3077_vm6, %v2910_v13, %v3086_v16 }
 0x391   :  { %v2911_v21 = vmax.f32 %v2777_v17, %v2778_v18 }
 0x392   :  { %v2919_v22 = vrot.slane %v2918_v19, 4 }
 0x393   :  { %v2912_v23 = vrot.slane %v2911_v21, 4 }
 0x394   :  { %v2920_v24 = vmax.f32 %v2918_v19, %v2919_v22 }
 0x395   :  { %v2913_v25 = vmax.f32 %v2911_v21, %v2912_v23 }
 0x396   :  { %v2921_v26 = vrot.slane %v2920_v24, 2 }
 0x397   :  { %v2914_v27 = vrot.slane %v2913_v25, 2 }
 0x398   :  { %v2922_v28 = vmax.f32 %v2920_v24, %v2921_v26 }
 0x399   :  { %v2915_v29 = vmax.f32 %v2913_v25, %v2914_v27  ;;  %v4048_v31 = vpop.f32.mrb[96].mxu1 }
 0x39a   :  { %v2923_v32 = vrot.slane %v2922_v28, 1  ;;  %v2631_v33 = vadd.f32 %v4048_v31, %v5121_v2  ;;  %v2622_v34 = vpop.f32.mrb[97].mxu1 }
 0x39b   :  { %v2916_v35 = vrot.slane %v2915_v29, 1  ;;  %v2623_v36 = vadd.f32 %v5121_v2, %v2622_v34  ;;  %v4049_v50 = vpop.f32.mrb[98].mxu1 }
 0x39c   :  { %v2634_v37 = vadd.f32 %v4049_v50, %v5121_v2  ;;  %v2625_v38 = vpop.f32.mrb[99].mxu1  ;;  %v2924_v40 = vmax.f32 %v2922_v28, %v2923_v32  ;;  %v2783_v41 = vmax.f32 %v2631_v33, 0.0 }
 0x39d   :  { %v2917_v39 = vmax.f32 %v2915_v29, %v2916_v35  ;;  %v2626_v55 = vadd.f32 %v5121_v2, %v2625_v38  ;;  %v2781_v44 = vmax.f32 %v2623_v36, 0.0 }
 0x39e   :  { %v2784_v42 = vmax.f32 %v2634_v37, 0.0 }
 0x39f   :  { %v3088_v43 = vsel %vm3079_vm7, %v2917_v39, %v3087_v20  ;;  %v2782_v45 = vmax.f32 %v2626_v55, 0.0 }
 0x3a0   :  { %v2932_v46 = vmax.f32 %v2783_v41, %v2784_v42  ;;  %v3089_v47 = vsel %vm3081_vm8, %v2924_v40, %v3088_v43 }
 0x3a1   :  { %v2925_v48 = vmax.f32 %v2781_v44, %v2782_v45  ;;  %3109 = vst [vmem:[#allocation2 + $0x8] sm:$0xff] %v3089_v47 }
 0x3a2   :  { %v2933_v49 = vrot.slane %v2932_v46, 4 }
 0x3a3   :  { %v2926_v51 = vrot.slane %v2925_v48, 4 }
 0x3a4   :  { %v2934_v52 = vmax.f32 %v2932_v46, %v2933_v49 }
 0x3a5   :  { %v2927_v53 = vmax.f32 %v2925_v48, %v2926_v51 }
 0x3a6   :  { %v2935_v54 = vrot.slane %v2934_v52, 2 }
 0x3a7   :  { %v2928_v56 = vrot.slane %v2927_v53, 2 }
 0x3a8   :  { %v2936_v57 = vmax.f32 %v2934_v52, %v2935_v54 }
 0x3a9   :  { %v2929_v58 = vmax.f32 %v2927_v53, %v2928_v56  ;;  %v4052_v59 = vpop.f32.mrb[100].mxu1 }
 0x3aa   :  { %v2937_v60 = vrot.slane %v2936_v57, 1  ;;  %v2647_v61 = vadd.f32 %v4052_v59, %v5121_v2  ;;  %v2638_v62 = vpop.f32.mrb[101].mxu1 }
 0x3ab   :  { %v2930_v63 = vrot.slane %v2929_v58, 1  ;;  %v2639_v0 = vadd.f32 %v5121_v2, %v2638_v62  ;;  %v4053_v1 = vpop.f32.mrb[102].mxu1 }
 0x3ac   :  { %v2938_v3 = vmax.f32 %v2936_v57, %v2937_v60  ;;  %v2650_v4 = vadd.f32 %v4053_v1, %v5121_v2  ;;  %v2641_v5 = vpop.f32.mrb[103].mxu1  ;;  %v2787_v30 = vmax.f32 %v2647_v61, 0.0 }
 0x3ad   :  { %v2931_v6 = vmax.f32 %v2929_v58, %v2930_v63  ;;  %v2642_v7 = vadd.f32 %v5121_v2, %v2641_v5  ;;  %v2785_v10 = vmax.f32 %v2639_v0, 0.0 }
 0x3ae   :  { %v2788_v8 = vmax.f32 %v2650_v4, 0.0 }
 0x3af   :  { %v3090_v9 = vsel %vm3069_vm2, %v2938_v3, %v2931_v6  ;;  %v2786_v11 = vmax.f32 %v2642_v7, 0.0 }
 0x3b0   :  { %v2946_v12 = vmax.f32 %v2787_v30, %v2788_v8 }
 0x3b1   :  { %v2939_v13 = vmax.f32 %v2785_v10, %v2786_v11 }
 0x3b2   :  { %v2947_v14 = vrot.slane %v2946_v12, 4 }
 0x3b3   :  { %v2940_v15 = vrot.slane %v2939_v13, 4 }
 0x3b4   :  { %v2948_v16 = vmax.f32 %v2946_v12, %v2947_v14 }
 0x3b5   :  { %v2941_v17 = vmax.f32 %v2939_v13, %v2940_v15 }
 0x3b6   :  { %v2949_v18 = vrot.slane %v2948_v16, 2 }
 0x3b7   :  { %v2942_v19 = vrot.slane %v2941_v17, 2 }
 0x3b8   :  { %v2950_v20 = vmax.f32 %v2948_v16, %v2949_v18 }
 0x3b9   :  { %v2943_v21 = vmax.f32 %v2941_v17, %v2942_v19  ;;  %v4056_v22 = vpop.f32.mrb[104].mxu1 }
 0x3ba   :  { %v2951_v23 = vrot.slane %v2950_v20, 1  ;;  %v2663_v24 = vadd.f32 %v4056_v22, %v5121_v2  ;;  %v2654_v25 = vpop.f32.mrb[105].mxu1 }
 0x3bb   :  { %v2944_v26 = vrot.slane %v2943_v21, 1  ;;  %v2655_v27 = vadd.f32 %v5121_v2, %v2654_v25  ;;  %v4057_v28 = vpop.f32.mrb[106].mxu1 }
 0x3bc   :  { %v2666_v29 = vadd.f32 %v4057_v28, %v5121_v2  ;;  %v2657_v31 = vpop.f32.mrb[107].mxu1  ;;  %v2952_v34 = vmax.f32 %v2950_v20, %v2951_v23  ;;  %v2791_v35 = vmax.f32 %v2663_v24, 0.0 }
 0x3bd   :  { %v2945_v32 = vmax.f32 %v2943_v21, %v2944_v26  ;;  %v2658_v33 = vadd.f32 %v5121_v2, %v2657_v31  ;;  %v2789_v37 = vmax.f32 %v2655_v27, 0.0 }
 0x3be   :  { %v2792_v36 = vmax.f32 %v2666_v29, 0.0 }
 0x3bf   :  { %v3091_v50 = vsel %vm3071_vm3, %v2945_v32, %v3090_v9  ;;  %v2790_v38 = vmax.f32 %v2658_v33, 0.0 }
 0x3c0   :  { %v2960_v39 = vmax.f32 %v2791_v35, %v2792_v36  ;;  %v3092_v55 = vsel %vm3073_vm4, %v2952_v34, %v3091_v50 }
 0x3c1   :  { %v2953_v40 = vmax.f32 %v2789_v37, %v2790_v38 }
 0x3c2   :  { %v2961_v41 = vrot.slane %v2960_v39, 4 }
 0x3c3   :  { %v2954_v42 = vrot.slane %v2953_v40, 4 }
 0x3c4   :  { %v2962_v43 = vmax.f32 %v2960_v39, %v2961_v41 }
 0x3c5   :  { %v2955_v44 = vmax.f32 %v2953_v40, %v2954_v42 }
 0x3c6   :  { %v2963_v45 = vrot.slane %v2962_v43, 2 }
 0x3c7   :  { %v2956_v46 = vrot.slane %v2955_v44, 2 }
 0x3c8   :  { %v2964_v47 = vmax.f32 %v2962_v43, %v2963_v45 }
 0x3c9   :  { %v2957_v48 = vmax.f32 %v2955_v44, %v2956_v46  ;;  %v4060_v49 = vpop.f32.mrb[108].mxu1 }
 0x3ca   :  { %v2965_v51 = vrot.slane %v2964_v47, 1  ;;  %v2679_v52 = vadd.f32 %v4060_v49, %v5121_v2  ;;  %v2670_v53 = vpop.f32.mrb[109].mxu1 }
 0x3cb   :  { %v2958_v54 = vrot.slane %v2957_v48, 1  ;;  %v2671_v56 = vadd.f32 %v5121_v2, %v2670_v53  ;;  %v4061_v57 = vpop.f32.mrb[110].mxu1 }
 0x3cc   :  { %v2682_v58 = vadd.f32 %v4061_v57, %v5121_v2  ;;  %v2673_v59 = vpop.f32.mrb[111].mxu1  ;;  %v2966_v62 = vmax.f32 %v2964_v47, %v2965_v51  ;;  %v2795_v63 = vmax.f32 %v2679_v52, 0.0 }
 0x3cd   :  { %v2959_v60 = vmax.f32 %v2957_v48, %v2958_v54  ;;  %v2674_v61 = vadd.f32 %v5121_v2, %v2673_v59  ;;  %v2793_v3 = vmax.f32 %v2671_v56, 0.0 }
 0x3ce   :  { %v2796_v0 = vmax.f32 %v2682_v58, 0.0 }
 0x3cf   :  { %v3093_v1 = vsel %vm3075_vm5, %v2959_v60, %v3092_v55  ;;  %v2794_v4 = vmax.f32 %v2674_v61, 0.0 }
 0x3d0   :  { %v2974_v5 = vmax.f32 %v2795_v63, %v2796_v0  ;;  %v3094_v6 = vsel %vm3077_vm6, %v2966_v62, %v3093_v1 }
 0x3d1   :  { %v2967_v7 = vmax.f32 %v2793_v3, %v2794_v4 }
 0x3d2   :  { %v2975_v30 = vrot.slane %v2974_v5, 4 }
 0x3d3   :  { %v2968_v8 = vrot.slane %v2967_v7, 4 }
 0x3d4   :  { %v2976_v9 = vmax.f32 %v2974_v5, %v2975_v30 }
 0x3d5   :  { %v2969_v10 = vmax.f32 %v2967_v7, %v2968_v8 }
 0x3d6   :  { %v2977_v11 = vrot.slane %v2976_v9, 2 }
 0x3d7   :  { %v2970_v12 = vrot.slane %v2969_v10, 2 }
 0x3d8   :  { %v2978_v13 = vmax.f32 %v2976_v9, %v2977_v11 }
 0x3d9   :  { %v2971_v14 = vmax.f32 %v2969_v10, %v2970_v12  ;;  %v4064_v15 = vpop.f32.mrb[112].mxu1 }
 0x3da   :  { %v2979_v16 = vrot.slane %v2978_v13, 1  ;;  %v2695_v17 = vadd.f32 %v4064_v15, %v5121_v2  ;;  %v2686_v18 = vpop.f32.mrb[113].mxu1 }
 0x3db   :  { %v2972_v19 = vrot.slane %v2971_v14, 1  ;;  %v2687_v20 = vadd.f32 %v5121_v2, %v2686_v18  ;;  %v4065_v21 = vpop.f32.mrb[114].mxu1 }
 0x3dc   :  { %v2698_v22 = vadd.f32 %v4065_v21, %v5121_v2  ;;  %v2689_v23 = vpop.f32.mrb[115].mxu1  ;;  %v2980_v26 = vmax.f32 %v2978_v13, %v2979_v16  ;;  %v2799_v27 = vmax.f32 %v2695_v17, 0.0 }
 0x3dd   :  { %v2973_v24 = vmax.f32 %v2971_v14, %v2972_v19  ;;  %v2690_v25 = vadd.f32 %v5121_v2, %v2689_v23  ;;  %v2797_v31 = vmax.f32 %v2687_v20, 0.0 }
 0x3de   :  { %v2800_v28 = vmax.f32 %v2698_v22, 0.0 }
 0x3df   :  { %v3095_v29 = vsel %vm3079_vm7, %v2973_v24, %v3094_v6  ;;  %v2798_v32 = vmax.f32 %v2690_v25, 0.0 }
 0x3e0   :  { %v2988_v33 = vmax.f32 %v2799_v27, %v2800_v28  ;;  %v3096_v34 = vsel %vm3081_vm8, %v2980_v26, %v3095_v29 }
 0x3e1   :  { %v2981_v35 = vmax.f32 %v2797_v31, %v2798_v32  ;;  %3110 = vst [vmem:[#allocation2 + $0x10] sm:$0xff] %v3096_v34 }
 0x3e2   :  { %v2989_v36 = vrot.slane %v2988_v33, 4 }
 0x3e3   :  { %v2982_v50 = vrot.slane %v2981_v35, 4 }
 0x3e4   :  { %v2990_v37 = vmax.f32 %v2988_v33, %v2989_v36 }
 0x3e5   :  { %v2983_v38 = vmax.f32 %v2981_v35, %v2982_v50 }
 0x3e6   :  { %v2991_v39 = vrot.slane %v2990_v37, 2 }
 0x3e7   :  { %v2984_v55 = vrot.slane %v2983_v38, 2 }
 0x3e8   :  { %v2992_v40 = vmax.f32 %v2990_v37, %v2991_v39 }
 0x3e9   :  { %v2985_v41 = vmax.f32 %v2983_v38, %v2984_v55  ;;  %v4068_v42 = vpop.f32.mrb[116].mxu1 }
 0x3ea   :  { %v2993_v43 = vrot.slane %v2992_v40, 1  ;;  %v2711_v44 = vadd.f32 %v4068_v42, %v5121_v2  ;;  %v2702_v45 = vpop.f32.mrb[117].mxu1 }
 0x3eb   :  { %v2986_v46 = vrot.slane %v2985_v41, 1  ;;  %v2703_v47 = vadd.f32 %v5121_v2, %v2702_v45  ;;  %v4069_v48 = vpop.f32.mrb[118].mxu1 }
 0x3ec   :  { %v2994_v49 = vmax.f32 %v2992_v40, %v2993_v43  ;;  %v2714_v51 = vadd.f32 %v4069_v48, %v5121_v2  ;;  %v2705_v52 = vpop.f32.mrb[119].mxu1  ;;  %v2803_v56 = vmax.f32 %v2711_v44, 0.0 }
 0x3ed   :  { %v2987_v53 = vmax.f32 %v2985_v41, %v2986_v46  ;;  %v2706_v54 = vadd.f32 %v5121_v2, %v2705_v52  ;;  %v2801_v59 = vmax.f32 %v2703_v47, 0.0 }
 0x3ee   :  { %v2804_v57 = vmax.f32 %v2714_v51, 0.0 }
 0x3ef   :  { %v3097_v58 = vsel %vm3069_vm2, %v2994_v49, %v2987_v53  ;;  %v2802_v60 = vmax.f32 %v2706_v54, 0.0 }
 0x3f0   :  { %v3002_v61 = vmax.f32 %v2803_v56, %v2804_v57 }
 0x3f1   :  { %v2995_v62 = vmax.f32 %v2801_v59, %v2802_v60 }
 0x3f2   :  { %v3003_v63 = vrot.slane %v3002_v61, 4 }
 0x3f3   :  { %v2996_v0 = vrot.slane %v2995_v62, 4 }
 0x3f4   :  { %v3004_v1 = vmax.f32 %v3002_v61, %v3003_v63 }
 0x3f5   :  { %v2997_v3 = vmax.f32 %v2995_v62, %v2996_v0 }
 0x3f6   :  { %v3005_v4 = vrot.slane %v3004_v1, 2 }
 0x3f7   :  { %v2998_v5 = vrot.slane %v2997_v3, 2 }
 0x3f8   :  { %v3006_v6 = vmax.f32 %v3004_v1, %v3005_v4 }
 0x3f9   :  { %v2999_v7 = vmax.f32 %v2997_v3, %v2998_v5  ;;  %v4072_v30 = vpop.f32.mrb[120].mxu1 }
 0x3fa   :  { %v3007_v8 = vrot.slane %v3006_v6, 1  ;;  %v2727_v9 = vadd.f32 %v4072_v30, %v5121_v2  ;;  %v2718_v10 = vpop.f32.mrb[121].mxu1 }
 0x3fb   :  { %v3000_v11 = vrot.slane %v2999_v7, 1  ;;  %v2719_v12 = vadd.f32 %v5121_v2, %v2718_v10  ;;  %v4073_v13 = vpop.f32.mrb[122].mxu1 }
 0x3fc   :  { %v2730_v14 = vadd.f32 %v4073_v13, %v5121_v2  ;;  %v2721_v15 = vpop.f32.mrb[123].mxu1  ;;  %v3008_v18 = vmax.f32 %v3006_v6, %v3007_v8  ;;  %v2807_v19 = vmax.f32 %v2727_v9, 0.0 }
 0x3fd   :  { %v3001_v16 = vmax.f32 %v2999_v7, %v3000_v11  ;;  %v2722_v17 = vadd.f32 %v5121_v2, %v2721_v15  ;;  %v2805_v22 = vmax.f32 %v2719_v12, 0.0 }
 0x3fe   :  { %v2808_v20 = vmax.f32 %v2730_v14, 0.0 }
 0x3ff   :  { %v3098_v21 = vsel %vm3071_vm3, %v3001_v16, %v3097_v58  ;;  %v2806_v23 = vmax.f32 %v2722_v17, 0.0 }
 0x400   :  { %v3016_v24 = vmax.f32 %v2807_v19, %v2808_v20  ;;  %v3099_v25 = vsel %vm3073_vm4, %v3008_v18, %v3098_v21 }
 0x401   :  { %v3009_v26 = vmax.f32 %v2805_v22, %v2806_v23 }
 0x402   :  { %v3017_v27 = vrot.slane %v3016_v24, 4 }
 0x403   :  { %v3010_v28 = vrot.slane %v3009_v26, 4 }
 0x404   :  { %v3018_v29 = vmax.f32 %v3016_v24, %v3017_v27 }
 0x405   :  { %v3011_v31 = vmax.f32 %v3009_v26, %v3010_v28 }
 0x406   :  { %v3019_v32 = vrot.slane %v3018_v29, 2 }
 0x407   :  { %v3012_v33 = vrot.slane %v3011_v31, 2 }
 0x408   :  { %v3020_v34 = vmax.f32 %v3018_v29, %v3019_v32 }
 0x409   :  { %v3013_v35 = vmax.f32 %v3011_v31, %v3012_v33  ;;  %v4076_v36 = vpop.f32.mrb[124].mxu1 }
 0x40a   :  { %v3021_v50 = vrot.slane %v3020_v34, 1  ;;  %v2743_v37 = vadd.f32 %v4076_v36, %v5121_v2  ;;  %v2734_v38 = vpop.f32.mrb[125].mxu1 }
 0x40b   :  { %v3014_v39 = vrot.slane %v3013_v35, 1  ;;  %v2735_v55 = vadd.f32 %v5121_v2, %v2734_v38  ;;  %v4077_v40 = vpop.f32.mrb[126].mxu1 }
 0x40c   :  { %v2746_v41 = vadd.f32 %v4077_v40, %v5121_v2  ;;  %v2737_v42 = vpop.f32.mrb[127].mxu1  ;;  %v3022_v45 = vmax.f32 %v3020_v34, %v3021_v50  ;;  %v2811_v46 = vmax.f32 %v2743_v37, 0.0 }
 0x40d   :  { %v3015_v43 = vmax.f32 %v3013_v35, %v3014_v39  ;;  %v2738_v44 = vadd.f32 %v5121_v2, %v2737_v42  ;;  %v2809_v49 = vmax.f32 %v2735_v55, 0.0 }
 0x40e   :  { %v2812_v47 = vmax.f32 %v2746_v41, 0.0 }
 0x40f   :  { %v3100_v48 = vsel %vm3075_vm5, %v3015_v43, %v3099_v25  ;;  %v2810_v51 = vmax.f32 %v2738_v44, 0.0 }
 0x410   :  { %v3030_v52 = vmax.f32 %v2811_v46, %v2812_v47  ;;  %v3101_v53 = vsel %vm3077_vm6, %v3022_v45, %v3100_v48 }
 0x411   :  { %v3023_v54 = vmax.f32 %v2809_v49, %v2810_v51 }
 0x412   :  { %v3031_v56 = vrot.slane %v3030_v52, 4 }
 0x413   :  { %v3024_v57 = vrot.slane %v3023_v54, 4 }
 0x414   :  { %v3032_v58 = vmax.f32 %v3030_v52, %v3031_v56 }
 0x415   :  { %v3025_v59 = vmax.f32 %v3023_v54, %v3024_v57 }
 0x416   :  { %v3033_v60 = vrot.slane %v3032_v58, 2 }
 0x417   :  { %v3026_v61 = vrot.slane %v3025_v59, 2 }
 0x418   :  { %v3034_v62 = vmax.f32 %v3032_v58, %v3033_v60 }
 0x419   :  { %v3027_v63 = vmax.f32 %v3025_v59, %v3026_v61 }
 0x41a   :  { %v3035_v2 = vrot.slane %v3034_v62, 1 }
 0x41b   :  { %v3028_v0 = vrot.slane %v3027_v63, 1 }
 0x41c   :  { %v3036_v3 = vmax.f32 %v3034_v62, %v3035_v2 }
 0x41d   :  { %v3029_v1 = vmax.f32 %v3027_v63, %v3028_v0 }
 0x41f   :  { %v3102_v4 = vsel %vm3079_vm7, %v3029_v1, %v3101_v53 }
 0x420   :  { %v3103_v5 = vsel %vm3081_vm8, %v3036_v3, %v3102_v4 }
 0x421   :  { %3111 = vst [vmem:[#allocation2 + $0x18] sm:$0xff] %v3103_v5 }
 0x422   :  { %4165 = shalt.err (!%p4162_p4)
}
 0x423   :  { %s4166_s9 = scalar_lea.hbm %s5237_s8, 512 }
 0x424   :  { %p4167_p5 = scmp.ne.s32.totalorder %s5237_s8, %s4166_s9  ;;  %p4170_p6 = scmp.lt.u32.totalorder %s4166_s9, %s5237_s8 }
 0x426   :  { %p4172_p7 = pnand %p4170_p6, %p4167_p5 }
 0x428   :  { %4175 = shalt.err (!%p4172_p7)
}
 0x429   :  { %s4181_s14 = smov 128   ;;  %s4182_s15 = smov 8  }
 0x42a   :  { %3123 = dma.vmem_to_hbm [thread:$0]  %s3118_s3, 512, %s5237_s8, [#allocation3], %s4181_s14, %s4181_s14, %s4182_s15  }
 0x42b   :  { %4176 = dma.done.wait [#allocation3], 512  }
 0x42c   :  { %4177 = vsyncadd [#allocation3], 4294966784 }
 0x42d   :  { %3127 = vsyncpa [#allocation3], 1 }

</bundles_post_ra>
